<compile_context>
chip_gen: v6e
topology: v6e:2x2x1
jax: 0.10.0
libtpu: 0.0.40
codegen_flags: <defaults>
</compile_context>

<pallas_src>
import functools

import jax
import jax.numpy as jnp
from jax.experimental import pallas as pl
from jax.experimental.pallas import tpu as pltpu


B1_DIL = (4, 8, 16)
B2_DIL = (2, 4, 8)

_PAR = pltpu.CompilerParams(dimension_semantics=("parallel",))


def _round_up(x, m):
    return ((x + m - 1) // m) * m


# ----------------------------------------------------------------------------
# Pallas kernels
# ----------------------------------------------------------------------------
def _fused_1x1_kernel(x_ref, w_ref, b_ref, o0_ref, o1_ref, o2_ref, o3_ref):
    # x_ref: (tm, Cin) f32; w_ref: (4, Cin, Cout) bf16; b_ref: (4, 1, Cout) f32.
    xb = x_ref[...].astype(jnp.bfloat16)
    outs = (o0_ref, o1_ref, o2_ref, o3_ref)  # branch0, branch1-in, branch2-in, conv_res
    for s in range(4):
        acc = jnp.dot(xb, w_ref[s], preferred_element_type=jnp.float32)
        outs[s][...] = jnp.maximum(acc + b_ref[s], 0.0).astype(outs[s].dtype)


def _dilated_3x3(pad_ref, w_ref, w_idx, col, acc, *, d, H, W, margin):
    """Accumulate one 'same' dilated 3x3 conv (input already in pad_ref) into acc."""
    M = H * W
    # Column-validity masks for the three horizontal taps (left / center / right);
    # row out-of-range taps read the zeroed scratch margins instead.
    masks = (col >= d, None, col < W - d)
    for ky in range(3):
        for kx in range(3):
            shift = (ky - 1) * d * W + (kx - 1) * d
            patch = pad_ref[margin + shift:margin + shift + M, :]
            if masks[kx] is not None:
                patch = jnp.where(masks[kx], patch, 0.0)
            acc = acc + jnp.dot(patch.astype(jnp.bfloat16),
                                w_ref[w_idx, ky * 3 + kx],
                                preferred_element_type=jnp.float32)
    return acc


def _branch_chain_kernel(x_ref, w_ref, b_ref, o_ref, pad_ref,
                         *, dils, H, W, margin):
    # One batch element: chain of three dilated 3x3 BasicConv2d, VMEM-resident.
    M = H * W
    C = o_ref.shape[-1]
    pad_ref[...] = jnp.zeros_like(pad_ref)            # zero margins (kept zero)
    col = jax.lax.broadcasted_iota(jnp.int32, (M, 1), 0) % W
    cur = x_ref[0]                                    # (M, C) f32
    for l, d in enumerate(dils):
        pad_ref[margin:margin + M, :] = cur           # 8-aligned interior write
        acc = jnp.zeros((M, C), jnp.float32)
        acc = _dilated_3x3(pad_ref, w_ref, l, col, acc,
                           d=d, H=H, W=W, margin=margin)
        cur = jnp.maximum(acc + b_ref[l], 0.0)
    o_ref[0] = cur.astype(o_ref.dtype)


def _cat_res_kernel(x0_ref, x1_ref, x2_ref, r_ref, w_ref, b_ref, o_ref, pad_ref,
                    *, H, W, margin):
    # conv_cat (3x3, d=1) over [x0|x1|x2] without materializing the concat,
    # fused with relu(x_cat + conv_res(x)).
    M = H * W
    C = o_ref.shape[-1]
    pad_ref[...] = jnp.zeros_like(pad_ref)
    col = jax.lax.broadcasted_iota(jnp.int32, (M, 1), 0) % W
    acc = jnp.zeros((M, C), jnp.float32)
    for s, src in enumerate((x0_ref, x1_ref, x2_ref)):
        pad_ref[margin:margin + M, :] = src[0]
        acc = _dilated_3x3(pad_ref, w_ref, s, col, acc,
                           d=1, H=H, W=W, margin=margin)
    y = jnp.maximum(acc + b_ref[...], 0.0)
    o_ref[0] = jnp.maximum(y + r_ref[0], 0.0).astype(o_ref.dtype)


# ----------------------------------------------------------------------------
# Kernel wrappers
# ----------------------------------------------------------------------------
def fused_conv1x1(x_flat, w4, b4, cout):
    """Four shared-input 1x1 BasicConv2d in one pallas_call -> 4 outputs."""
    M, Cin = x_flat.shape
    tm = min(512, M)                      # 512-row tiles; cdiv grid masks tail
    grid = (pl.cdiv(M, tm),)
    cost = pl.CostEstimate(
        flops=2 * M * Cin * 4 * cout, transcendentals=0,
        bytes_accessed=M * Cin * 4 + 4 * Cin * cout * 2 + 4 * M * cout * 4)
    return pl.pallas_call(
        _fused_1x1_kernel,
        out_shape=tuple(jax.ShapeDtypeStruct((M, cout), jnp.float32)
                        for _ in range(4)),
        grid=grid,
        in_specs=[pl.BlockSpec((tm, Cin), lambda i: (i, 0)),
                  pl.BlockSpec(w4.shape, lambda i: (0, 0, 0)),
                  pl.BlockSpec(b4.shape, lambda i: (0, 0, 0))],
        out_specs=tuple(pl.BlockSpec((tm, cout), lambda i: (i, 0))
                        for _ in range(4)),
        compiler_params=_PAR,
        cost_estimate=cost,
    )(x_flat, w4, b4)


def branch_chain(x_nmc, w_stack, b_stack, dils, H, W):
    """Three dilated 3x3 BasicConv2d fused into one pallas_call (per batch)."""
    N, M, C = x_nmc.shape
    margin = _round_up(max(dils) * (W + 1), 8)
    kernel = functools.partial(_branch_chain_kernel, dils=tuple(dils),
                               H=H, W=W, margin=margin)
    cost = pl.CostEstimate(
        flops=len(dils) * 2 * N * M * 9 * C * C, transcendentals=0,
        bytes_accessed=2 * N * M * C * 4 + len(dils) * 9 * C * C * 2)
    # TODO(synk): for large H*W, tile spatially (row slabs + dilation halo)
    # instead of one full image per grid step so VMEM stays bounded on v7x.
    return pl.pallas_call(
        kernel,
        out_shape=jax.ShapeDtypeStruct((N, M, C), jnp.float32),
        grid=(N,),
        in_specs=[pl.BlockSpec((1, M, C), lambda n: (n, 0, 0)),
                  pl.BlockSpec(w_stack.shape, lambda n: (0, 0, 0, 0)),
                  pl.BlockSpec(b_stack.shape, lambda n: (0, 0, 0))],
        out_specs=pl.BlockSpec((1, M, C), lambda n: (n, 0, 0)),
        scratch_shapes=[pltpu.VMEM((M + 2 * margin, C), jnp.float32)],
        compiler_params=_PAR,
        cost_estimate=cost,
    )(x_nmc, w_stack, b_stack)


def conv_cat_res(x0, x1, x2, res, w_cat, b_cat, H, W):
    """conv_cat over the (never materialized) concat + fused residual relu."""
    N, M, C = x0.shape
    margin = _round_up(W + 1, 8)
    kernel = functools.partial(_cat_res_kernel, H=H, W=W, margin=margin)
    spec = pl.BlockSpec((1, M, C), lambda n: (n, 0, 0))
    cost = pl.CostEstimate(
        flops=3 * 2 * N * M * 9 * C * C, transcendentals=0,
        bytes_accessed=5 * N * M * C * 4 + 3 * 9 * C * C * 2)
    return pl.pallas_call(
        kernel,
        out_shape=jax.ShapeDtypeStruct((N, M, C), jnp.float32),
        grid=(N,),
        in_specs=[spec, spec, spec, spec,
                  pl.BlockSpec(w_cat.shape, lambda n: (0, 0, 0, 0)),
                  pl.BlockSpec(b_cat.shape, lambda n: (0, 0))],
        out_specs=spec,
        scratch_shapes=[pltpu.VMEM((M + 2 * margin, C), jnp.float32)],
        compiler_params=_PAR,
        cost_estimate=cost,
    )(x0, x1, x2, res, w_cat, b_cat)


# ----------------------------------------------------------------------------
# Parameter init (deterministic, synthetic), BN folding, packing
# ----------------------------------------------------------------------------
def _fold_bn(w, gamma, beta, mean, var, eps=1e-5):
    scale = gamma / jnp.sqrt(var + eps)
    return w * scale, beta - mean * scale


def _init_basic_conv(key, cin, cout, k):
    kw_, kg, kb, km, kv = jax.random.split(key, 5)
    w = jax.random.normal(kw_, (k, k, cin, cout), jnp.float32) * 0.2   # HWIO
    gamma = 1.0 + 0.1 * jax.random.normal(kg, (cout,), jnp.float32)
    beta = 0.1 * jax.random.normal(kb, (cout,), jnp.float32)
    mean = 0.1 * jax.random.normal(km, (cout,), jnp.float32)
    var = 0.5 + jax.random.uniform(kv, (cout,), jnp.float32)
    return _fold_bn(w, gamma, beta, mean, var)
    # TODO(synk): training-mode BatchNorm (batch statistics + running-stat
    # updates) is not reproduced; eval-mode (folded running stats) is used.


def init_params(key, cin, cout):
    ks = jax.random.split(key, 11)
    p = {}
    p["b0"] = [_init_basic_conv(ks[0], cin, cout, 1)]
    p["b1"] = [
        _init_basic_conv(ks[1], cin, cout, 1),
        _init_basic_conv(ks[2], cout, cout, 3),
        _init_basic_conv(ks[3], cout, cout, 3),
        _init_basic_conv(ks[4], cout, cout, 3),
    ]
    p["b2"] = [
        _init_basic_conv(ks[5], cin, cout, 1),
        _init_basic_conv(ks[6], cout, cout, 3),
        _init_basic_conv(ks[7], cout, cout, 3),
        _init_basic_conv(ks[8], cout, cout, 3),
    ]
    p["cat"] = _init_basic_conv(ks[9], 3 * cout, cout, 3)
    p["res"] = _init_basic_conv(ks[10], cin, cout, 1)
    return p


def pack_params(p):
    """Pack folded weights for the fused kernels (bf16 matmul operands)."""
    bf16, f32 = jnp.bfloat16, jnp.float32
    w_b0, b_b0 = p["b0"][0]
    w_b1, b_b1 = p["b1"][0]
    w_b2, b_b2 = p["b2"][0]
    w_rs, b_rs = p["res"]
    Cin, Cout = w_b0.shape[-2], w_b0.shape[-1]

    # Four shared-input 1x1 convs stacked along a leading "head" axis.
    w1x1 = jnp.stack([w.reshape(Cin, Cout)
                      for w in (w_b0, w_b1, w_b2, w_rs)]).astype(bf16)
    b1x1 = jnp.stack([b.reshape(1, Cout)
                      for b in (b_b0, b_b1, b_b2, b_rs)]).astype(f32)

    def chain(layers):
        ws = jnp.stack([w.reshape(9, Cout, Cout) for w, _ in layers]).astype(bf16)
        bs = jnp.stack([b.reshape(1, Cout) for _, b in layers]).astype(f32)
        return ws, bs

    w_c1, b_c1 = chain(p["b1"][1:])
    w_c2, b_c2 = chain(p["b2"][1:])

    # conv_cat weight split along its input-channel axis (x0 | x1 | x2).
    wc, bc = p["cat"]
    w_cat = jnp.stack(
        [wc[:, :, s * Cout:(s + 1) * Cout, :].reshape(9, Cout, Cout)
         for s in range(3)]).astype(bf16)
    b_cat = bc.reshape(1, Cout).astype(f32)

    return dict(w1x1=w1x1, b1x1=b1x1, w_c1=w_c1, b_c1=b_c1,
                w_c2=w_c2, b_c2=b_c2, w_cat=w_cat, b_cat=b_cat, cout=Cout)


# ----------------------------------------------------------------------------
# MBDC forward (Pallas) and pure-JAX reference
# ----------------------------------------------------------------------------
def mbdc_forward(x_nchw, p):
    x = jnp.transpose(x_nchw, (0, 2, 3, 1)).astype(jnp.float32)   # NCHW -> NHWC
    N, H, W, Cin = x.shape
    pk = pack_params(p)
    C = pk["cout"]
    M = H * W

    x0, x1_in, x2_in, res = fused_conv1x1(
        x.reshape(N * M, Cin), pk["w1x1"], pk["b1x1"], C)
    x0 = x0.reshape(N, M, C)
    res = res.reshape(N, M, C)
    x1 = branch_chain(x1_in.reshape(N, M, C), pk["w_c1"], pk["b_c1"], B1_DIL, H, W)
    x2 = branch_chain(x2_in.reshape(N, M, C), pk["w_c2"], pk["b_c2"], B2_DIL, H, W)
    out = conv_cat_res(x0, x1, x2, res, pk["w_cat"], pk["b_cat"], H, W)
    return jnp.transpose(out.reshape(N, H, W, C), (0, 3, 1, 2))    # back to NCHW


def mbdc_reference(x_nchw, p):
    x = jnp.transpose(x_nchw, (0, 2, 3, 1)).astype(jnp.float32)

    def bc(xx, w, b, dil, pad):
        y = jax.lax.conv_general_dilated(
            xx, w, (1, 1), [(pad, pad), (pad, pad)],
            rhs_dilation=(dil, dil),
            dimension_numbers=("NHWC", "HWIO", "NHWC"))
        return jnp.maximum(y + b, 0.0)

    x0 = bc(x, *p["b0"][0], 1, 0)
    x1 = bc(x, *p["b1"][0], 1, 0)
    for (w, b), d in zip(p["b1"][1:], B1_DIL):
        x1 = bc(x1, w, b, d, d)
    x2 = bc(x, *p["b2"][0], 1, 0)
    for (w, b), d in zip(p["b2"][1:], B2_DIL):
        x2 = bc(x2, w, b, d, d)
    xcat = bc(jnp.concatenate([x0, x1, x2], -1), *p["cat"], 1, 1)
    res = bc(x, *p["res"], 1, 0)
    out = jnp.maximum(xcat + res, 0.0)
    return jnp.transpose(out, (0, 3, 1, 2))


# ----------------------------------------------------------------------------
if __name__ == "__main__":
    N, Cin, H, W = 2, 4, 16, 16
    Cout = 8
    x = jax.random.normal(jax.random.PRNGKey(0), (N, Cin, H, W), jnp.float32)
    params = init_params(jax.random.PRNGKey(1), Cin, Cout)

    out = jax.block_until_ready(mbdc_forward(x, params))
    assert out.shape == (N, Cout, H, W), out.shape

    ref = mbdc_reference(x, params)
    # bf16 MXU operands (f32 accumulation) -> slightly looser tolerance.
    if not bool(jnp.allclose(out, ref, atol=1e-1, rtol=5e-2)):
        err = float(jnp.max(jnp.abs(out - ref)))
        raise AssertionError(f"Pallas MBDC output mismatch (max abs err {err})")

    print("KERNEL_OK")
</pallas_src>

<mosaic_0001>
module attributes {stable_mosaic.version = 11 : i64} {
  func.func @_fused_1x1_kernel(%arg0: i32, %arg1: memref<512x4xf32, #tpu.memory_space<vmem>>, %arg2: memref<4x4x8xbf16, #tpu.memory_space<vmem>>, %arg3: memref<4x1x8xf32, #tpu.memory_space<vmem>>, %arg4: memref<512x8xf32, #tpu.memory_space<vmem>>, %arg5: memref<512x8xf32, #tpu.memory_space<vmem>>, %arg6: memref<512x8xf32, #tpu.memory_space<vmem>>, %arg7: memref<512x8xf32, #tpu.memory_space<vmem>>) attributes {dimension_semantics = [#tpu.dimension_semantics<parallel>], iteration_bounds = array<i64: 1>, scalar_prefetch = 0 : i64, scratch_operands = 0 : i64, tpu.core_type = #tpu.core_type<tc>, window_params = [{transform_indices = @transform_0, window_bounds = array<i64: 512, 4>}, {pipeline_mode = #tpu.pipeline_mode<synchronous>, transform_indices = @transform_1, window_bounds = array<i64: 4, 4, 8>}, {pipeline_mode = #tpu.pipeline_mode<synchronous>, transform_indices = @transform_2, window_bounds = array<i64: 4, 1, 8>}, {transform_indices = @transform_3, window_bounds = array<i64: 512, 8>}, {transform_indices = @transform_4, window_bounds = array<i64: 512, 8>}, {transform_indices = @transform_5, window_bounds = array<i64: 512, 8>}, {transform_indices = @transform_6, window_bounds = array<i64: 512, 8>}]} {
    %c0 = arith.constant 0 : index
    %c0_0 = arith.constant 0 : index
    %0 = vector.load %arg1[%c0, %c0_0] : memref<512x4xf32, #tpu.memory_space<vmem>>, vector<512x4xf32>
    %1 = arith.truncf %0 : vector<512x4xf32> to vector<512x4xbf16>
    %c0_1 = arith.constant 0 : index
    %c0_2 = arith.constant 0 : index
    %c0_3 = arith.constant 0 : index
    %2 = vector.load %arg2[%c0_1, %c0_2, %c0_3] : memref<4x4x8xbf16, #tpu.memory_space<vmem>>, vector<1x4x8xbf16>
    %3 = vector.shape_cast %2 : vector<1x4x8xbf16> to vector<4x8xbf16>
    %cst = arith.constant dense<0.000000e+00> : vector<512x8xf32>
    %4 = tpu.matmul %1, %3, %cst {dimension_numbers = #tpu.dot_dimension_numbers<[1], [0], [0], [1], [0, 0, 1, 1], [], []>} : vector<512x4xbf16>, vector<4x8xbf16>, vector<512x8xf32> -> vector<512x8xf32>
    %c0_4 = arith.constant 0 : index
    %c0_5 = arith.constant 0 : index
    %c0_6 = arith.constant 0 : index
    %5 = vector.load %arg3[%c0_4, %c0_5, %c0_6] : memref<4x1x8xf32, #tpu.memory_space<vmem>>, vector<1x1x8xf32>
    %6 = vector.shape_cast %5 : vector<1x1x8xf32> to vector<1x8xf32>
    %7 = vector.broadcast %6 : vector<1x8xf32> to vector<512x8xf32>
    %8 = arith.addf %4, %7 : vector<512x8xf32>
    %cst_7 = arith.constant 0.000000e+00 : f32
    %9 = vector.broadcast %cst_7 : f32 to vector<512x8xf32>
    %10 = arith.maximumf %8, %9 : vector<512x8xf32>
    %c0_8 = arith.constant 0 : index
    %c0_9 = arith.constant 0 : index
    %11 = vector.load %arg4[%c0_8, %c0_9] : memref<512x8xf32, #tpu.memory_space<vmem>>, vector<512x8xf32>
    tpu.vector_store %arg4[%c0_8, %c0_9], %10 {strides = array<i32>} : memref<512x8xf32, #tpu.memory_space<vmem>>, vector<512x8xf32>,
    %c1 = arith.constant 1 : index
    %c0_10 = arith.constant 0 : index
    %c0_11 = arith.constant 0 : index
    %12 = vector.load %arg2[%c1, %c0_10, %c0_11] : memref<4x4x8xbf16, #tpu.memory_space<vmem>>, vector<1x4x8xbf16>
    %13 = vector.shape_cast %12 : vector<1x4x8xbf16> to vector<4x8xbf16>
    %cst_12 = arith.constant dense<0.000000e+00> : vector<512x8xf32>
    %14 = tpu.matmul %1, %13, %cst_12 {dimension_numbers = #tpu.dot_dimension_numbers<[1], [0], [0], [1], [0, 0, 1, 1], [], []>} : vector<512x4xbf16>, vector<4x8xbf16>, vector<512x8xf32> -> vector<512x8xf32>
    %c1_13 = arith.constant 1 : index
    %c0_14 = arith.constant 0 : index
    %c0_15 = arith.constant 0 : index
    %15 = vector.load %arg3[%c1_13, %c0_14, %c0_15] : memref<4x1x8xf32, #tpu.memory_space<vmem>>, vector<1x1x8xf32>
    %16 = vector.shape_cast %15 : vector<1x1x8xf32> to vector<1x8xf32>
    %17 = vector.broadcast %16 : vector<1x8xf32> to vector<512x8xf32>
    %18 = arith.addf %14, %17 : vector<512x8xf32>
    %cst_16 = arith.constant 0.000000e+00 : f32
    %19 = vector.broadcast %cst_16 : f32 to vector<512x8xf32>
    %20 = arith.maximumf %18, %19 : vector<512x8xf32>
    %c0_17 = arith.constant 0 : index
    %c0_18 = arith.constant 0 : index
    %21 = vector.load %arg5[%c0_17, %c0_18] : memref<512x8xf32, #tpu.memory_space<vmem>>, vector<512x8xf32>
    tpu.vector_store %arg5[%c0_17, %c0_18], %20 {strides = array<i32>} : memref<512x8xf32, #tpu.memory_space<vmem>>, vector<512x8xf32>,
    %c2 = arith.constant 2 : index
    %c0_19 = arith.constant 0 : index
    %c0_20 = arith.constant 0 : index
    %22 = vector.load %arg2[%c2, %c0_19, %c0_20] : memref<4x4x8xbf16, #tpu.memory_space<vmem>>, vector<1x4x8xbf16>
    %23 = vector.shape_cast %22 : vector<1x4x8xbf16> to vector<4x8xbf16>
    %cst_21 = arith.constant dense<0.000000e+00> : vector<512x8xf32>
    %24 = tpu.matmul %1, %23, %cst_21 {dimension_numbers = #tpu.dot_dimension_numbers<[1], [0], [0], [1], [0, 0, 1, 1], [], []>} : vector<512x4xbf16>, vector<4x8xbf16>, vector<512x8xf32> -> vector<512x8xf32>
    %c2_22 = arith.constant 2 : index
    %c0_23 = arith.constant 0 : index
    %c0_24 = arith.constant 0 : index
    %25 = vector.load %arg3[%c2_22, %c0_23, %c0_24] : memref<4x1x8xf32, #tpu.memory_space<vmem>>, vector<1x1x8xf32>
    %26 = vector.shape_cast %25 : vector<1x1x8xf32> to vector<1x8xf32>
    %27 = vector.broadcast %26 : vector<1x8xf32> to vector<512x8xf32>
    %28 = arith.addf %24, %27 : vector<512x8xf32>
    %cst_25 = arith.constant 0.000000e+00 : f32
    %29 = vector.broadcast %cst_25 : f32 to vector<512x8xf32>
    %30 = arith.maximumf %28, %29 : vector<512x8xf32>
    %c0_26 = arith.constant 0 : index
    %c0_27 = arith.constant 0 : index
    %31 = vector.load %arg6[%c0_26, %c0_27] : memref<512x8xf32, #tpu.memory_space<vmem>>, vector<512x8xf32>
    tpu.vector_store %arg6[%c0_26, %c0_27], %30 {strides = array<i32>} : memref<512x8xf32, #tpu.memory_space<vmem>>, vector<512x8xf32>,
    %c3 = arith.constant 3 : index
    %c0_28 = arith.constant 0 : index
    %c0_29 = arith.constant 0 : index
    %32 = vector.load %arg2[%c3, %c0_28, %c0_29] : memref<4x4x8xbf16, #tpu.memory_space<vmem>>, vector<1x4x8xbf16>
    %33 = vector.shape_cast %32 : vector<1x4x8xbf16> to vector<4x8xbf16>
    %cst_30 = arith.constant dense<0.000000e+00> : vector<512x8xf32>
    %34 = tpu.matmul %1, %33, %cst_30 {dimension_numbers = #tpu.dot_dimension_numbers<[1], [0], [0], [1], [0, 0, 1, 1], [], []>} : vector<512x4xbf16>, vector<4x8xbf16>, vector<512x8xf32> -> vector<512x8xf32>
    %c3_31 = arith.constant 3 : index
    %c0_32 = arith.constant 0 : index
    %c0_33 = arith.constant 0 : index
    %35 = vector.load %arg3[%c3_31, %c0_32, %c0_33] : memref<4x1x8xf32, #tpu.memory_space<vmem>>, vector<1x1x8xf32>
    %36 = vector.shape_cast %35 : vector<1x1x8xf32> to vector<1x8xf32>
    %37 = vector.broadcast %36 : vector<1x8xf32> to vector<512x8xf32>
    %38 = arith.addf %34, %37 : vector<512x8xf32>
    %cst_34 = arith.constant 0.000000e+00 : f32
    %39 = vector.broadcast %cst_34 : f32 to vector<512x8xf32>
    %40 = arith.maximumf %38, %39 : vector<512x8xf32>
    %c0_35 = arith.constant 0 : index
    %c0_36 = arith.constant 0 : index
    %41 = vector.load %arg7[%c0_35, %c0_36] : memref<512x8xf32, #tpu.memory_space<vmem>>, vector<512x8xf32>
    tpu.vector_store %arg7[%c0_35, %c0_36], %40 {strides = array<i32>} : memref<512x8xf32, #tpu.memory_space<vmem>>, vector<512x8xf32>,
    return
  }
  func.func @transform_0(%arg0: i32) -> (i32, i32) {
    %c0_i32 = arith.constant 0 : i32
    %c0_i32_0 = arith.constant 0 : i32
    return %arg0, %c0_i32 : i32, i32
  }
  func.func @transform_1(%arg0: i32) -> (i32, i32, i32) {
    %c0_i32 = arith.constant 0 : i32
    %c0_i32_0 = arith.constant 0 : i32
    %c0_i32_1 = arith.constant 0 : i32
    %c0_i32_2 = arith.constant 0 : i32
    return %c0_i32, %c0_i32_0, %c0_i32_1 : i32, i32, i32
  }
  func.func @transform_2(%arg0: i32) -> (i32, i32, i32) {
    %c0_i32 = arith.constant 0 : i32
    %c0_i32_0 = arith.constant 0 : i32
    %c0_i32_1 = arith.constant 0 : i32
    %c0_i32_2 = arith.constant 0 : i32
    return %c0_i32, %c0_i32_0, %c0_i32_1 : i32, i32, i32
  }
  func.func @transform_3(%arg0: i32) -> (i32, i32) {
    %c0_i32 = arith.constant 0 : i32
    %c0_i32_0 = arith.constant 0 : i32
    return %arg0, %c0_i32 : i32, i32
  }
  func.func @transform_4(%arg0: i32) -> (i32, i32) {
    %c0_i32 = arith.constant 0 : i32
    %c0_i32_0 = arith.constant 0 : i32
    return %arg0, %c0_i32 : i32, i32
  }
  func.func @transform_5(%arg0: i32) -> (i32, i32) {
    %c0_i32 = arith.constant 0 : i32
    %c0_i32_0 = arith.constant 0 : i32
    return %arg0, %c0_i32 : i32, i32
  }
  func.func @transform_6(%arg0: i32) -> (i32, i32) {
    %c0_i32 = arith.constant 0 : i32
    %c0_i32_0 = arith.constant 0 : i32
    return %arg0, %c0_i32 : i32, i32
  }
}

</mosaic_0001>

<bundles_post_ra>
// kernel: tpu_custom_call.1
= control target key start
LH: loop header
LB: loop body
LE: loop exit
PB: predicated region body
PF: predicated region fallthrough
CT: control target
= control target key end

     0   :  { %vm220_vm0 = vcmask 1041408   ;;  %vm123_vm1 = vcmask 31744   ;;  %vm577_vm2 = vcmask 64512   ;;  %s4357_s1 = inlined_call_operand.vmem [shape: bf16[4,4,8], index: 1, kind: input, shape index: {}]   ;;  %s4358_s0 = inlined_call_operand.vmem [shape: f32[512,4], index: 0, kind: input, shape index: {}]   ;;  %s4359_s2 = inlined_call_operand.vmem [shape: f32[4,1,8], index: 2, kind: input, shape index: {}]   ;;  %s4360_s3 = inlined_call_operand.vmem [shape: f32[512,8], index: 3, kind: output, shape index: {0}]   ;;  %s4361_s4 = inlined_call_operand.vmem [shape: f32[512,8], index: 4, kind: output, shape index: {1}]   ;;  %s4362_s5 = inlined_call_operand.vmem [shape: f32[512,8], index: 5, kind: output, shape index: {2}]   ;;  %s4363_s6 = inlined_call_operand.vmem [shape: f32[512,8], index: 6, kind: output, shape index: {3}]  }
   0x1   :  { %v115_v0 = vld [vmem:[%s4357_s1] sm:$0x3]  ;;  %v1981_v1 = vld [vmem:[%s4357_s1 + $0x2] sm:$0x3]  ;;  %v20_v5 = vld [vmem:[%s4358_s0 + $0x8] sm:$0xff] }
   0x2   :  { %v19_v2 = vld [vmem:[%s4358_s0] sm:$0xff]  ;;  %2482 = vmatprep.subr.msk.bf16.mxu0 %vm220_vm0, %v115_v0  ;;  %2483 = vmatprep.subr.msk.bf16.mxu1 %vm220_vm0, %v1981_v1  ;;  %v222_v3 = vsel %vm220_vm0, %v115_v0, 0  ;;  %v653_v4 = vsel %vm220_vm0, %v1981_v1, 0  ;;  %v21_v6 = vld [vmem:[%s4358_s0 + $0x10] sm:$0xff]  ;;  %v22_v7 = vld [vmem:[%s4358_s0 + $0x18] sm:$0xff] }
   0x3   :  { %2219 = vmatpush3.bf16.msra.mxu0 %v222_v3  ;;  %2285 = vmatpush3.bf16.msra.mxu1 %v653_v4  ;;  %v2547_v8 = vpack.c.bf16 %v20_v5, %v19_v2  ;;  %v2549_v9 = vpack.c.bf16 %v22_v7, %v21_v6  ;;  %v2016_v10 = vld [vmem:[%s4357_s1 + $0x4] sm:$0x3]  ;;  %v2051_v11 = vld [vmem:[%s4357_s1 + $0x6] sm:$0x3]  ;;  %v24_v15 = vld [vmem:[%s4358_s0 + $0x28] sm:$0xff] }
   0x4   :  { %v23_v12 = vld [vmem:[%s4358_s0 + $0x20] sm:$0xff]  ;;  %2484 = vmatprep.subr.msk.bf16.mxu0 %vm220_vm0, %v2016_v10  ;;  %2485 = vmatprep.subr.msk.bf16.mxu1 %vm220_vm0, %v2051_v11  ;;  %v1083_v13 = vsel %vm220_vm0, %v2016_v10, 0  ;;  %v1513_v14 = vsel %vm220_vm0, %v2051_v11, 0  ;;  %v25_v17 = vld [vmem:[%s4358_s0 + $0x30] sm:$0xff]  ;;  %v26_v18 = vld [vmem:[%s4358_s0 + $0x38] sm:$0xff] }
   0x5   :  { %2220 = vmatprep.mubr.msk.bf16.mxu0 %vm123_vm1, %v2547_v8  ;;  %2286 = vmatprep.mubr.msk.bf16.mxu1 %vm123_vm1, %v2547_v8  ;;  %v2571_v16 = vpack.c.bf16 %v24_v15, %v23_v12  ;;  %v27_v19 = vld [vmem:[%s4358_s0 + $0x40] sm:$0xff]  ;;  %v28_v20 = vld [vmem:[%s4358_s0 + $0x48] sm:$0xff]  ;;  %v2593_v21 = vpack.c.bf16 %v26_v18, %v25_v17  ;;  %v29_v23 = vld [vmem:[%s4358_s0 + $0x50] sm:$0xff] }
   0x6   :  { %2221 = vmatmul.mubr.msk.bf16.vlgmr.msra.gmra.mxu0 %vm123_vm1, %v2549_v9  ;;  %2287 = vmatmul.mubr.msk.bf16.vlgmr.msra.gmra.mxu1 %vm123_vm1, %v2549_v9  ;;  %v2595_v22 = vpack.c.bf16 %v28_v20, %v27_v19  ;;  %v30_v24 = vld [vmem:[%s4358_s0 + $0x58] sm:$0xff]  ;;  %v31_v25 = vld [vmem:[%s4358_s0 + $0x60] sm:$0xff]  ;;  %v32_v26 = vld [vmem:[%s4358_s0 + $0x68] sm:$0xff] }
   0x7   :  { %2351 = vmatpush3.bf16.msra.mxu0 %v1083_v13  ;;  %2417 = vmatpush3.bf16.msra.mxu1 %v1513_v14  ;;  %v2617_v27 = vpack.c.bf16 %v30_v24, %v29_v23  ;;  %v2619_v28 = vpack.c.bf16 %v32_v26, %v31_v25  ;;  %v33_v29 = vld [vmem:[%s4358_s0 + $0x70] sm:$0xff]  ;;  %v34_v30 = vld [vmem:[%s4358_s0 + $0x78] sm:$0xff]  ;;  %v35_v31 = vld [vmem:[%s4358_s0 + $0x80] sm:$0xff] }
   0x8   :  { %2224 = vmatprep.mubr.msk.bf16.mxu0 %vm123_vm1, %v2571_v16  ;;  %2290 = vmatprep.mubr.msk.bf16.mxu1 %vm123_vm1, %v2571_v16  ;;  %v36_v32 = vld [vmem:[%s4358_s0 + $0x88] sm:$0xff]  ;;  %v2641_v33 = vpack.c.bf16 %v34_v30, %v33_v29  ;;  %v37_v35 = vld [vmem:[%s4358_s0 + $0x90] sm:$0xff]  ;;  %v38_v36 = vld [vmem:[%s4358_s0 + $0x98] sm:$0xff] }
   0x9   :  { %v2643_v34 = vpack.c.bf16 %v36_v32, %v35_v31  ;;  %v39_v37 = vld [vmem:[%s4358_s0 + $0xa0] sm:$0xff]  ;;  %v40_v38 = vld [vmem:[%s4358_s0 + $0xa8] sm:$0xff]  ;;  %v2665_v39 = vpack.c.bf16 %v38_v36, %v37_v35  ;;  %v41_v41 = vld [vmem:[%s4358_s0 + $0xb0] sm:$0xff] }
   0xa   :  { %v2667_v40 = vpack.c.bf16 %v40_v38, %v39_v37  ;;  %v42_v42 = vld [vmem:[%s4358_s0 + $0xb8] sm:$0xff]  ;;  %v43_v43 = vld [vmem:[%s4358_s0 + $0xc0] sm:$0xff]  ;;  %v44_v44 = vld [vmem:[%s4358_s0 + $0xc8] sm:$0xff] }
   0xb   :  { %v2689_v45 = vpack.c.bf16 %v42_v42, %v41_v41  ;;  %v2691_v46 = vpack.c.bf16 %v44_v44, %v43_v43  ;;  %v45_v47 = vld [vmem:[%s4358_s0 + $0xd0] sm:$0xff]  ;;  %v46_v48 = vld [vmem:[%s4358_s0 + $0xd8] sm:$0xff]  ;;  %v47_v49 = vld [vmem:[%s4358_s0 + $0xe0] sm:$0xff] }
   0xc   :  { %v48_v50 = vld [vmem:[%s4358_s0 + $0xe8] sm:$0xff]  ;;  %v2713_v51 = vpack.c.bf16 %v46_v48, %v45_v47  ;;  %v49_v53 = vld [vmem:[%s4358_s0 + $0xf0] sm:$0xff]  ;;  %v50_v54 = vld [vmem:[%s4358_s0 + $0xf8] sm:$0xff] }
   0xd   :  { %v2715_v52 = vpack.c.bf16 %v48_v50, %v47_v49  ;;  %v51_v55 = vld [vmem:[%s4358_s0 + $0x100] sm:$0xff]  ;;  %v52_v56 = vld [vmem:[%s4358_s0 + $0x108] sm:$0xff]  ;;  %v2737_v57 = vpack.c.bf16 %v50_v54, %v49_v53  ;;  %v53_v59 = vld [vmem:[%s4358_s0 + $0x110] sm:$0xff] }
   0xe   :  { %2225 = vmatmul.mubr.msk.bf16.gmra.mxu0 %vm123_vm1, %v2593_v21  ;;  %2291 = vmatmul.mubr.msk.bf16.gmra.mxu1 %vm123_vm1, %v2593_v21  ;;  %v2739_v58 = vpack.c.bf16 %v52_v56, %v51_v55  ;;  %v54_v60 = vld [vmem:[%s4358_s0 + $0x118] sm:$0xff]  ;;  %v55_v61 = vld [vmem:[%s4358_s0 + $0x120] sm:$0xff]  ;;  %v56_v62 = vld [vmem:[%s4358_s0 + $0x128] sm:$0xff] }
   0xf   :  { %2228 = vmatprep.mubr.msk.bf16.mxu0 %vm123_vm1, %v2595_v22  ;;  %2294 = vmatprep.mubr.msk.bf16.mxu1 %vm123_vm1, %v2595_v22  ;;  %v2761_v63 = vpack.c.bf16 %v54_v60, %v53_v59  ;;  %v2763_v0 = vpack.c.bf16 %v56_v62, %v55_v61  ;;  %v57_v1 = vld [vmem:[%s4358_s0 + $0x130] sm:$0xff]  ;;  %v58_v2 = vld [vmem:[%s4358_s0 + $0x138] sm:$0xff]  ;;  %v59_v3 = vld [vmem:[%s4358_s0 + $0x140] sm:$0xff] }
  0x10   :  { %v60_v4 = vld [vmem:[%s4358_s0 + $0x148] sm:$0xff]  ;;  %v2785_v5 = vpack.c.bf16 %v58_v2, %v57_v1  ;;  %v61_v7 = vld [vmem:[%s4358_s0 + $0x150] sm:$0xff]  ;;  %v62_v10 = vld [vmem:[%s4358_s0 + $0x158] sm:$0xff] }
  0x11   :  { %v2787_v6 = vpack.c.bf16 %v60_v4, %v59_v3  ;;  %v63_v11 = vld [vmem:[%s4358_s0 + $0x160] sm:$0xff]  ;;  %v64_v12 = vld [vmem:[%s4358_s0 + $0x168] sm:$0xff]  ;;  %v2809_v13 = vpack.c.bf16 %v62_v10, %v61_v7  ;;  %v65_v15 = vld [vmem:[%s4358_s0 + $0x170] sm:$0xff] }
  0x12   :  { %v2811_v14 = vpack.c.bf16 %v64_v12, %v63_v11  ;;  %v66_v17 = vld [vmem:[%s4358_s0 + $0x178] sm:$0xff]  ;;  %v67_v18 = vld [vmem:[%s4358_s0 + $0x180] sm:$0xff]  ;;  %v68_v19 = vld [vmem:[%s4358_s0 + $0x188] sm:$0xff] }
  0x13   :  { %v2833_v20 = vpack.c.bf16 %v66_v17, %v65_v15  ;;  %v2835_v23 = vpack.c.bf16 %v68_v19, %v67_v18  ;;  %v69_v24 = vld [vmem:[%s4358_s0 + $0x190] sm:$0xff]  ;;  %v70_v25 = vld [vmem:[%s4358_s0 + $0x198] sm:$0xff]  ;;  %v71_v26 = vld [vmem:[%s4358_s0 + $0x1a0] sm:$0xff] }
  0x14   :  { %v72_v29 = vld [vmem:[%s4358_s0 + $0x1a8] sm:$0xff]  ;;  %v2857_v30 = vpack.c.bf16 %v70_v25, %v69_v24  ;;  %v73_v32 = vld [vmem:[%s4358_s0 + $0x1b0] sm:$0xff]  ;;  %v74_v35 = vld [vmem:[%s4358_s0 + $0x1b8] sm:$0xff] }
  0x15   :  { %v2859_v31 = vpack.c.bf16 %v72_v29, %v71_v26  ;;  %v75_v36 = vld [vmem:[%s4358_s0 + $0x1c0] sm:$0xff]  ;;  %v76_v37 = vld [vmem:[%s4358_s0 + $0x1c8] sm:$0xff]  ;;  %v2881_v38 = vpack.c.bf16 %v74_v35, %v73_v32  ;;  %v77_v42 = vld [vmem:[%s4358_s0 + $0x1d0] sm:$0xff] }
  0x16   :  { %2229 = vmatmul.mubr.msk.bf16.gmra.mxu0 %vm123_vm1, %v2617_v27  ;;  %2295 = vmatmul.mubr.msk.bf16.gmra.mxu1 %vm123_vm1, %v2617_v27  ;;  %v2883_v41 = vpack.c.bf16 %v76_v37, %v75_v36  ;;  %v78_v43 = vld [vmem:[%s4358_s0 + $0x1d8] sm:$0xff]  ;;  %v79_v44 = vld [vmem:[%s4358_s0 + $0x1e0] sm:$0xff]  ;;  %v80_v47 = vld [vmem:[%s4358_s0 + $0x1e8] sm:$0xff] }
  0x17   :  { %2232 = vmatprep.mubr.msk.bf16.mxu0 %vm123_vm1, %v2619_v28  ;;  %2298 = vmatprep.mubr.msk.bf16.mxu1 %vm123_vm1, %v2619_v28  ;;  %v2905_v48 = vpack.c.bf16 %v78_v43, %v77_v42  ;;  %v2907_v49 = vpack.c.bf16 %v80_v47, %v79_v44  ;;  %v81_v50 = vld [vmem:[%s4358_s0 + $0x1f0] sm:$0xff]  ;;  %v82_v53 = vld [vmem:[%s4358_s0 + $0x1f8] sm:$0xff] }
  0x18   :  { %v2923_v54 = vpack.c.bf16 %v82_v53, %v81_v50 }
  0x1e   :  { %2233 = vmatmul.mubr.msk.bf16.gmra.mxu0 %vm123_vm1, %v2641_v33  ;;  %2299 = vmatmul.mubr.msk.bf16.gmra.mxu1 %vm123_vm1, %v2641_v33 }
  0x1f   :  { %2236 = vmatprep.mubr.msk.bf16.mxu0 %vm123_vm1, %v2643_v34  ;;  %2302 = vmatprep.mubr.msk.bf16.mxu1 %vm123_vm1, %v2643_v34 }
  0x26   :  { %2237 = vmatmul.mubr.msk.bf16.gmra.mxu0 %vm123_vm1, %v2665_v39  ;;  %2303 = vmatmul.mubr.msk.bf16.gmra.mxu1 %vm123_vm1, %v2665_v39 }
  0x27   :  { %2240 = vmatprep.mubr.msk.bf16.mxu0 %vm123_vm1, %v2667_v40  ;;  %2306 = vmatprep.mubr.msk.bf16.mxu1 %vm123_vm1, %v2667_v40 }
  0x2e   :  { %2241 = vmatmul.mubr.msk.bf16.gmra.mxu0 %vm123_vm1, %v2689_v45  ;;  %2307 = vmatmul.mubr.msk.bf16.gmra.mxu1 %vm123_vm1, %v2689_v45 }
  0x2f   :  { %2244 = vmatprep.mubr.msk.bf16.mxu0 %vm123_vm1, %v2691_v46  ;;  %2310 = vmatprep.mubr.msk.bf16.mxu1 %vm123_vm1, %v2691_v46 }
  0x36   :  { %2245 = vmatmul.mubr.msk.bf16.gmra.mxu0 %vm123_vm1, %v2713_v51  ;;  %2311 = vmatmul.mubr.msk.bf16.gmra.mxu1 %vm123_vm1, %v2713_v51 }
  0x37   :  { %2248 = vmatprep.mubr.msk.bf16.mxu0 %vm123_vm1, %v2715_v52  ;;  %2314 = vmatprep.mubr.msk.bf16.mxu1 %vm123_vm1, %v2715_v52 }
  0x3e   :  { %2249 = vmatmul.mubr.msk.bf16.gmra.mxu0 %vm123_vm1, %v2737_v57  ;;  %2315 = vmatmul.mubr.msk.bf16.gmra.mxu1 %vm123_vm1, %v2737_v57 }
  0x3f   :  { %2252 = vmatprep.mubr.msk.bf16.mxu0 %vm123_vm1, %v2739_v58  ;;  %2318 = vmatprep.mubr.msk.bf16.mxu1 %vm123_vm1, %v2739_v58 }
  0x46   :  { %2253 = vmatmul.mubr.msk.bf16.gmra.mxu0 %vm123_vm1, %v2761_v63  ;;  %2319 = vmatmul.mubr.msk.bf16.gmra.mxu1 %vm123_vm1, %v2761_v63 }
  0x47   :  { %2256 = vmatprep.mubr.msk.bf16.mxu0 %vm123_vm1, %v2763_v0  ;;  %2322 = vmatprep.mubr.msk.bf16.mxu1 %vm123_vm1, %v2763_v0 }
  0x4e   :  { %2257 = vmatmul.mubr.msk.bf16.gmra.mxu0 %vm123_vm1, %v2785_v5  ;;  %2323 = vmatmul.mubr.msk.bf16.gmra.mxu1 %vm123_vm1, %v2785_v5 }
  0x4f   :  { %2260 = vmatprep.mubr.msk.bf16.mxu0 %vm123_vm1, %v2787_v6  ;;  %2326 = vmatprep.mubr.msk.bf16.mxu1 %vm123_vm1, %v2787_v6 }
  0x56   :  { %2261 = vmatmul.mubr.msk.bf16.gmra.mxu0 %vm123_vm1, %v2809_v13  ;;  %2327 = vmatmul.mubr.msk.bf16.gmra.mxu1 %vm123_vm1, %v2809_v13 }
  0x57   :  { %2264 = vmatprep.mubr.msk.bf16.mxu0 %vm123_vm1, %v2811_v14  ;;  %2330 = vmatprep.mubr.msk.bf16.mxu1 %vm123_vm1, %v2811_v14 }
  0x5e   :  { %2265 = vmatmul.mubr.msk.bf16.gmra.mxu0 %vm123_vm1, %v2833_v20  ;;  %2331 = vmatmul.mubr.msk.bf16.gmra.mxu1 %vm123_vm1, %v2833_v20 }
  0x5f   :  { %2268 = vmatprep.mubr.msk.bf16.mxu0 %vm123_vm1, %v2835_v23  ;;  %2334 = vmatprep.mubr.msk.bf16.mxu1 %vm123_vm1, %v2835_v23 }
  0x66   :  { %2269 = vmatmul.mubr.msk.bf16.gmra.mxu0 %vm123_vm1, %v2857_v30  ;;  %2335 = vmatmul.mubr.msk.bf16.gmra.mxu1 %vm123_vm1, %v2857_v30 }
  0x67   :  { %2272 = vmatprep.mubr.msk.bf16.mxu0 %vm123_vm1, %v2859_v31  ;;  %2338 = vmatprep.mubr.msk.bf16.mxu1 %vm123_vm1, %v2859_v31 }
  0x6e   :  { %2273 = vmatmul.mubr.msk.bf16.gmra.mxu0 %vm123_vm1, %v2881_v38  ;;  %2339 = vmatmul.mubr.msk.bf16.gmra.mxu1 %vm123_vm1, %v2881_v38 }
  0x6f   :  { %2276 = vmatprep.mubr.msk.bf16.mxu0 %vm123_vm1, %v2883_v41  ;;  %2342 = vmatprep.mubr.msk.bf16.mxu1 %vm123_vm1, %v2883_v41 }
  0x76   :  { %2277 = vmatmul.mubr.msk.bf16.gmra.mxu0 %vm123_vm1, %v2905_v48  ;;  %2343 = vmatmul.mubr.msk.bf16.gmra.mxu1 %vm123_vm1, %v2905_v48 }
  0x77   :  { %2280 = vmatprep.mubr.msk.bf16.mxu0 %vm123_vm1, %v2907_v49  ;;  %2346 = vmatprep.mubr.msk.bf16.mxu1 %vm123_vm1, %v2907_v49 }
  0x7e   :  { %2281 = vmatmul.mubr.msk.bf16.gmra.mxu0 %vm123_vm1, %v2923_v54  ;;  %2347 = vmatmul.mubr.msk.bf16.gmra.mxu1 %vm123_vm1, %v2923_v54 }
  0x7f   :  { %2352 = vmatprep.mubr.msk.bf16.mxu0 %vm123_vm1, %v2547_v8  ;;  %2418 = vmatprep.mubr.msk.bf16.mxu1 %vm123_vm1, %v2547_v8  ;;  %v3000_v8 = vld [vmem:[%s4359_s2] ss:$0 sm:$0xff] }
  0x86   :  { %2353 = vmatmul.mubr.msk.bf16.vlgmr.msra.gmra.mxu0 %vm123_vm1, %v2549_v9  ;;  %2419 = vmatmul.mubr.msk.bf16.vlgmr.msra.gmra.mxu1 %vm123_vm1, %v2549_v9  ;;  %v3005_v9 = vld [vmem:[%s4359_s2 + $0x1] ss:$0 sm:$0xff] }
  0x87   :  { %2356 = vmatprep.mubr.msk.bf16.mxu0 %vm123_vm1, %v2571_v16  ;;  %2422 = vmatprep.mubr.msk.bf16.mxu1 %vm123_vm1, %v2571_v16 }
  0x8e   :  { %2357 = vmatmul.mubr.msk.bf16.gmra.mxu0 %vm123_vm1, %v2593_v21  ;;  %2423 = vmatmul.mubr.msk.bf16.gmra.mxu1 %vm123_vm1, %v2593_v21 }
  0x8f   :  { %2360 = vmatprep.mubr.msk.bf16.mxu0 %vm123_vm1, %v2595_v22  ;;  %2426 = vmatprep.mubr.msk.bf16.mxu1 %vm123_vm1, %v2595_v22 }
  0x96   :  { %2361 = vmatmul.mubr.msk.bf16.gmra.mxu0 %vm123_vm1, %v2617_v27  ;;  %2427 = vmatmul.mubr.msk.bf16.gmra.mxu1 %vm123_vm1, %v2617_v27 }
  0x97   :  { %2364 = vmatprep.mubr.msk.bf16.mxu0 %vm123_vm1, %v2619_v28  ;;  %2430 = vmatprep.mubr.msk.bf16.mxu1 %vm123_vm1, %v2619_v28 }
  0x9e   :  { %2365 = vmatmul.mubr.msk.bf16.gmra.mxu0 %vm123_vm1, %v2641_v33  ;;  %2431 = vmatmul.mubr.msk.bf16.gmra.mxu1 %vm123_vm1, %v2641_v33 }
  0x9f   :  { %2368 = vmatprep.mubr.msk.bf16.mxu0 %vm123_vm1, %v2643_v34  ;;  %2434 = vmatprep.mubr.msk.bf16.mxu1 %vm123_vm1, %v2643_v34 }
  0xa6   :  { %2369 = vmatmul.mubr.msk.bf16.gmra.mxu0 %vm123_vm1, %v2665_v39  ;;  %2435 = vmatmul.mubr.msk.bf16.gmra.mxu1 %vm123_vm1, %v2665_v39 }
  0xa7   :  { %2372 = vmatprep.mubr.msk.bf16.mxu0 %vm123_vm1, %v2667_v40  ;;  %2438 = vmatprep.mubr.msk.bf16.mxu1 %vm123_vm1, %v2667_v40 }
  0xae   :  { %2373 = vmatmul.mubr.msk.bf16.gmra.mxu0 %vm123_vm1, %v2689_v45  ;;  %2439 = vmatmul.mubr.msk.bf16.gmra.mxu1 %vm123_vm1, %v2689_v45 }
  0xaf   :  { %2376 = vmatprep.mubr.msk.bf16.mxu0 %vm123_vm1, %v2691_v46  ;;  %2442 = vmatprep.mubr.msk.bf16.mxu1 %vm123_vm1, %v2691_v46 }
  0xb6   :  { %2377 = vmatmul.mubr.msk.bf16.gmra.mxu0 %vm123_vm1, %v2713_v51  ;;  %2443 = vmatmul.mubr.msk.bf16.gmra.mxu1 %vm123_vm1, %v2713_v51 }
  0xb7   :  { %2380 = vmatprep.mubr.msk.bf16.mxu0 %vm123_vm1, %v2715_v52  ;;  %2446 = vmatprep.mubr.msk.bf16.mxu1 %vm123_vm1, %v2715_v52 }
  0xbe   :  { %2381 = vmatmul.mubr.msk.bf16.gmra.mxu0 %vm123_vm1, %v2737_v57  ;;  %2447 = vmatmul.mubr.msk.bf16.gmra.mxu1 %vm123_vm1, %v2737_v57 }
  0xbf   :  { %2384 = vmatprep.mubr.msk.bf16.mxu0 %vm123_vm1, %v2739_v58  ;;  %2450 = vmatprep.mubr.msk.bf16.mxu1 %vm123_vm1, %v2739_v58 }
  0xc6   :  { %v2222_v16 = vpop.f32.mrf.mxu0  ;;  %v2288_v21 = vpop.f32.mrf.mxu1  ;;  %2385 = vmatmul.mubr.msk.bf16.gmra.mxu0 %vm123_vm1, %v2761_v63  ;;  %2451 = vmatmul.mubr.msk.bf16.gmra.mxu1 %vm123_vm1, %v2761_v63 }
  0xc7   :  { %v267_v22 = vadd.f32 %v2222_v16, %v3000_v8  ;;  %v698_v27 = vadd.f32 %v2288_v21, %v3005_v9  ;;  %2388 = vmatprep.mubr.msk.bf16.mxu0 %vm123_vm1, %v2763_v0  ;;  %2454 = vmatprep.mubr.msk.bf16.mxu1 %vm123_vm1, %v2763_v0 }
  0xc8   :  { %v258_v28 = vpop.f32.mrf.mxu0  ;;  %v689_v33 = vpop.f32.mrf.mxu1 }
  0xc9   :  { %v515_v34 = vmax.f32 %v267_v22, 0.0  ;;  %v946_v39 = vmax.f32 %v698_v27, 0.0  ;;  %v259_v40 = vadd.f32 %v3000_v8, %v258_v28  ;;  %v690_v45 = vadd.f32 %v3005_v9, %v689_v33 }
  0xca   :  { %v2223_v46 = vpop.f32.mrf.mxu0  ;;  %v2289_v51 = vpop.f32.mrf.mxu1 }
  0xcb   :  { %580 = vst.msk [vmem:[%s4360_s3 + $0x10] sm:$0xff] %vm577_vm2, %v515_v34  ;;  %1010 = vst.msk [vmem:[%s4361_s4 + $0x10] sm:$0xff] %vm577_vm2, %v946_v39  ;;  %v513_v52 = vmax.f32 %v259_v40, 0.0  ;;  %v944_v55 = vmax.f32 %v690_v45, 0.0  ;;  %v270_v56 = vadd.f32 %v2223_v46, %v3000_v8  ;;  %v701_v57 = vadd.f32 %v2289_v51, %v3005_v9 }
  0xcc   :  { %v261_v58 = vpop.f32.mrf.mxu0  ;;  %v692_v59 = vpop.f32.mrf.mxu1 }
  0xcd   :  { %578 = vst.msk [vmem:[%s4360_s3] sm:$0xff] %vm577_vm2, %v513_v52  ;;  %1008 = vst.msk [vmem:[%s4361_s4] sm:$0xff] %vm577_vm2, %v944_v55  ;;  %v516_v60 = vmax.f32 %v270_v56, 0.0  ;;  %v947_v61 = vmax.f32 %v701_v57, 0.0  ;;  %v262_v62 = vadd.f32 %v3000_v8, %v261_v58  ;;  %v693_v63 = vadd.f32 %v3005_v9, %v692_v59 }
  0xce   :  { %v2226_v0 = vpop.f32.mrf.mxu0  ;;  %v2292_v1 = vpop.f32.mrf.mxu1  ;;  %2389 = vmatmul.mubr.msk.bf16.gmra.mxu0 %vm123_vm1, %v2785_v5  ;;  %2455 = vmatmul.mubr.msk.bf16.gmra.mxu1 %vm123_vm1, %v2785_v5 }
  0xcf   :  { %581 = vst.msk [vmem:[%s4360_s3 + $0x18] sm:$0xff] %vm577_vm2, %v516_v60  ;;  %1011 = vst.msk [vmem:[%s4361_s4 + $0x18] sm:$0xff] %vm577_vm2, %v947_v61  ;;  %v514_v2 = vmax.f32 %v262_v62, 0.0  ;;  %v945_v3 = vmax.f32 %v693_v63, 0.0  ;;  %v283_v4 = vadd.f32 %v2226_v0, %v3000_v8  ;;  %v714_v7 = vadd.f32 %v2292_v1, %v3005_v9  ;;  %2392 = vmatprep.mubr.msk.bf16.mxu0 %vm123_vm1, %v2787_v6 }
  0xd0   :  { %2458 = vmatprep.mubr.msk.bf16.mxu1 %vm123_vm1, %v2787_v6  ;;  %v274_v5 = vpop.f32.mrf.mxu0  ;;  %v705_v10 = vpop.f32.mrf.mxu1 }
  0xd1   :  { %579 = vst.msk [vmem:[%s4360_s3 + $0x8] sm:$0xff] %vm577_vm2, %v514_v2  ;;  %1009 = vst.msk [vmem:[%s4361_s4 + $0x8] sm:$0xff] %vm577_vm2, %v945_v3  ;;  %v519_v11 = vmax.f32 %v283_v4, 0.0  ;;  %v950_v12 = vmax.f32 %v714_v7, 0.0  ;;  %v275_v15 = vadd.f32 %v3000_v8, %v274_v5  ;;  %v706_v17 = vadd.f32 %v3005_v9, %v705_v10 }
  0xd2   :  { %v2227_v18 = vpop.f32.mrf.mxu0  ;;  %v2293_v6 = vpop.f32.mrf.mxu1 }
  0xd3   :  { %584 = vst.msk [vmem:[%s4360_s3 + $0x30] sm:$0xff] %vm577_vm2, %v519_v11  ;;  %1014 = vst.msk [vmem:[%s4361_s4 + $0x30] sm:$0xff] %vm577_vm2, %v950_v12  ;;  %v517_v19 = vmax.f32 %v275_v15, 0.0  ;;  %v948_v24 = vmax.f32 %v706_v17, 0.0  ;;  %v286_v25 = vadd.f32 %v2227_v18, %v3000_v8  ;;  %v717_v26 = vadd.f32 %v2293_v6, %v3005_v9 }
  0xd4   :  { %v277_v29 = vpop.f32.mrf.mxu0  ;;  %v708_v32 = vpop.f32.mrf.mxu1 }
  0xd5   :  { %582 = vst.msk [vmem:[%s4360_s3 + $0x20] sm:$0xff] %vm577_vm2, %v517_v19  ;;  %1012 = vst.msk [vmem:[%s4361_s4 + $0x20] sm:$0xff] %vm577_vm2, %v948_v24  ;;  %v520_v35 = vmax.f32 %v286_v25, 0.0  ;;  %v951_v36 = vmax.f32 %v717_v26, 0.0  ;;  %v278_v37 = vadd.f32 %v3000_v8, %v277_v29  ;;  %v709_v42 = vadd.f32 %v3005_v9, %v708_v32 }
  0xd6   :  { %v2230_v43 = vpop.f32.mrf.mxu0  ;;  %v2296_v44 = vpop.f32.mrf.mxu1  ;;  %2393 = vmatmul.mubr.msk.bf16.gmra.mxu0 %vm123_vm1, %v2809_v13  ;;  %2459 = vmatmul.mubr.msk.bf16.gmra.mxu1 %vm123_vm1, %v2809_v13 }
  0xd7   :  { %585 = vst.msk [vmem:[%s4360_s3 + $0x38] sm:$0xff] %vm577_vm2, %v520_v35  ;;  %1015 = vst.msk [vmem:[%s4361_s4 + $0x38] sm:$0xff] %vm577_vm2, %v951_v36  ;;  %v518_v47 = vmax.f32 %v278_v37, 0.0  ;;  %v949_v50 = vmax.f32 %v709_v42, 0.0  ;;  %v299_v53 = vadd.f32 %v2230_v43, %v3000_v8  ;;  %v730_v16 = vadd.f32 %v2296_v44, %v3005_v9  ;;  %2396 = vmatprep.mubr.msk.bf16.mxu0 %vm123_vm1, %v2811_v14 }
  0xd8   :  { %2462 = vmatprep.mubr.msk.bf16.mxu1 %vm123_vm1, %v2811_v14  ;;  %v290_v13 = vpop.f32.mrf.mxu0  ;;  %v721_v21 = vpop.f32.mrf.mxu1 }
  0xd9   :  { %583 = vst.msk [vmem:[%s4360_s3 + $0x28] sm:$0xff] %vm577_vm2, %v518_v47  ;;  %1013 = vst.msk [vmem:[%s4361_s4 + $0x28] sm:$0xff] %vm577_vm2, %v949_v50  ;;  %v523_v22 = vmax.f32 %v299_v53, 0.0  ;;  %v954_v27 = vmax.f32 %v730_v16, 0.0  ;;  %v291_v28 = vadd.f32 %v3000_v8, %v290_v13  ;;  %v722_v33 = vadd.f32 %v3005_v9, %v721_v21 }
  0xda   :  { %v2231_v34 = vpop.f32.mrf.mxu0  ;;  %v2297_v14 = vpop.f32.mrf.mxu1 }
  0xdb   :  { %588 = vst.msk [vmem:[%s4360_s3 + $0x50] sm:$0xff] %vm577_vm2, %v523_v22  ;;  %1018 = vst.msk [vmem:[%s4361_s4 + $0x50] sm:$0xff] %vm577_vm2, %v954_v27  ;;  %v521_v39 = vmax.f32 %v291_v28, 0.0  ;;  %v952_v40 = vmax.f32 %v722_v33, 0.0  ;;  %v302_v45 = vadd.f32 %v2231_v34, %v3000_v8  ;;  %v733_v46 = vadd.f32 %v2297_v14, %v3005_v9 }
  0xdc   :  { %v293_v51 = vpop.f32.mrf.mxu0  ;;  %v724_v52 = vpop.f32.mrf.mxu1 }
  0xdd   :  { %586 = vst.msk [vmem:[%s4360_s3 + $0x40] sm:$0xff] %vm577_vm2, %v521_v39  ;;  %1016 = vst.msk [vmem:[%s4361_s4 + $0x40] sm:$0xff] %vm577_vm2, %v952_v40  ;;  %v524_v55 = vmax.f32 %v302_v45, 0.0  ;;  %v955_v56 = vmax.f32 %v733_v46, 0.0  ;;  %v294_v57 = vadd.f32 %v3000_v8, %v293_v51  ;;  %v725_v58 = vadd.f32 %v3005_v9, %v724_v52 }
  0xde   :  { %v2234_v59 = vpop.f32.mrf.mxu0  ;;  %v2300_v60 = vpop.f32.mrf.mxu1  ;;  %2397 = vmatmul.mubr.msk.bf16.gmra.mxu0 %vm123_vm1, %v2833_v20  ;;  %2463 = vmatmul.mubr.msk.bf16.gmra.mxu1 %vm123_vm1, %v2833_v20 }
  0xdf   :  { %589 = vst.msk [vmem:[%s4360_s3 + $0x58] sm:$0xff] %vm577_vm2, %v524_v55  ;;  %1019 = vst.msk [vmem:[%s4361_s4 + $0x58] sm:$0xff] %vm577_vm2, %v955_v56  ;;  %v522_v61 = vmax.f32 %v294_v57, 0.0  ;;  %v953_v62 = vmax.f32 %v725_v58, 0.0  ;;  %v315_v63 = vadd.f32 %v2234_v59, %v3000_v8  ;;  %v746_v0 = vadd.f32 %v2300_v60, %v3005_v9  ;;  %2400 = vmatprep.mubr.msk.bf16.mxu0 %vm123_vm1, %v2835_v23 }
  0xe0   :  { %2466 = vmatprep.mubr.msk.bf16.mxu1 %vm123_vm1, %v2835_v23  ;;  %v306_v20 = vpop.f32.mrf.mxu0  ;;  %v737_v1 = vpop.f32.mrf.mxu1 }
  0xe1   :  { %587 = vst.msk [vmem:[%s4360_s3 + $0x48] sm:$0xff] %vm577_vm2, %v522_v61  ;;  %1017 = vst.msk [vmem:[%s4361_s4 + $0x48] sm:$0xff] %vm577_vm2, %v953_v62  ;;  %v527_v2 = vmax.f32 %v315_v63, 0.0  ;;  %v958_v3 = vmax.f32 %v746_v0, 0.0  ;;  %v307_v4 = vadd.f32 %v3000_v8, %v306_v20  ;;  %v738_v7 = vadd.f32 %v3005_v9, %v737_v1 }
  0xe2   :  { %v2235_v5 = vpop.f32.mrf.mxu0  ;;  %v2301_v23 = vpop.f32.mrf.mxu1 }
  0xe3   :  { %592 = vst.msk [vmem:[%s4360_s3 + $0x70] sm:$0xff] %vm577_vm2, %v527_v2  ;;  %1022 = vst.msk [vmem:[%s4361_s4 + $0x70] sm:$0xff] %vm577_vm2, %v958_v3  ;;  %v525_v10 = vmax.f32 %v307_v4, 0.0  ;;  %v956_v11 = vmax.f32 %v738_v7, 0.0  ;;  %v318_v12 = vadd.f32 %v2235_v5, %v3000_v8  ;;  %v749_v15 = vadd.f32 %v2301_v23, %v3005_v9 }
  0xe4   :  { %v309_v17 = vpop.f32.mrf.mxu0  ;;  %v740_v18 = vpop.f32.mrf.mxu1 }
  0xe5   :  { %590 = vst.msk [vmem:[%s4360_s3 + $0x60] sm:$0xff] %vm577_vm2, %v525_v10  ;;  %1020 = vst.msk [vmem:[%s4361_s4 + $0x60] sm:$0xff] %vm577_vm2, %v956_v11  ;;  %v528_v6 = vmax.f32 %v318_v12, 0.0  ;;  %v959_v19 = vmax.f32 %v749_v15, 0.0  ;;  %v310_v24 = vadd.f32 %v3000_v8, %v309_v17  ;;  %v741_v25 = vadd.f32 %v3005_v9, %v740_v18 }
  0xe6   :  { %v2238_v26 = vpop.f32.mrf.mxu0  ;;  %v2304_v29 = vpop.f32.mrf.mxu1  ;;  %2401 = vmatmul.mubr.msk.bf16.gmra.mxu0 %vm123_vm1, %v2857_v30  ;;  %2467 = vmatmul.mubr.msk.bf16.gmra.mxu1 %vm123_vm1, %v2857_v30 }
  0xe7   :  { %593 = vst.msk [vmem:[%s4360_s3 + $0x78] sm:$0xff] %vm577_vm2, %v528_v6  ;;  %1023 = vst.msk [vmem:[%s4361_s4 + $0x78] sm:$0xff] %vm577_vm2, %v959_v19  ;;  %v526_v32 = vmax.f32 %v310_v24, 0.0  ;;  %v957_v35 = vmax.f32 %v741_v25, 0.0  ;;  %v331_v36 = vadd.f32 %v2238_v26, %v3000_v8  ;;  %v762_v37 = vadd.f32 %v2304_v29, %v3005_v9  ;;  %2404 = vmatprep.mubr.msk.bf16.mxu0 %vm123_vm1, %v2859_v31 }
  0xe8   :  { %2470 = vmatprep.mubr.msk.bf16.mxu1 %vm123_vm1, %v2859_v31  ;;  %v322_v30 = vpop.f32.mrf.mxu0  ;;  %v753_v42 = vpop.f32.mrf.mxu1 }
  0xe9   :  { %591 = vst.msk [vmem:[%s4360_s3 + $0x68] sm:$0xff] %vm577_vm2, %v526_v32  ;;  %1021 = vst.msk [vmem:[%s4361_s4 + $0x68] sm:$0xff] %vm577_vm2, %v957_v35  ;;  %v531_v43 = vmax.f32 %v331_v36, 0.0  ;;  %v962_v44 = vmax.f32 %v762_v37, 0.0  ;;  %v323_v47 = vadd.f32 %v3000_v8, %v322_v30  ;;  %v754_v50 = vadd.f32 %v3005_v9, %v753_v42 }
  0xea   :  { %v2239_v53 = vpop.f32.mrf.mxu0  ;;  %v2305_v31 = vpop.f32.mrf.mxu1 }
  0xeb   :  { %596 = vst.msk [vmem:[%s4360_s3 + $0x90] sm:$0xff] %vm577_vm2, %v531_v43  ;;  %1026 = vst.msk [vmem:[%s4361_s4 + $0x90] sm:$0xff] %vm577_vm2, %v962_v44  ;;  %v529_v16 = vmax.f32 %v323_v47, 0.0  ;;  %v960_v13 = vmax.f32 %v754_v50, 0.0  ;;  %v334_v21 = vadd.f32 %v2239_v53, %v3000_v8  ;;  %v765_v22 = vadd.f32 %v2305_v31, %v3005_v9 }
  0xec   :  { %v325_v27 = vpop.f32.mrf.mxu0  ;;  %v756_v28 = vpop.f32.mrf.mxu1 }
  0xed   :  { %594 = vst.msk [vmem:[%s4360_s3 + $0x80] sm:$0xff] %vm577_vm2, %v529_v16  ;;  %1024 = vst.msk [vmem:[%s4361_s4 + $0x80] sm:$0xff] %vm577_vm2, %v960_v13  ;;  %v532_v33 = vmax.f32 %v334_v21, 0.0  ;;  %v963_v34 = vmax.f32 %v765_v22, 0.0  ;;  %v326_v14 = vadd.f32 %v3000_v8, %v325_v27  ;;  %v757_v39 = vadd.f32 %v3005_v9, %v756_v28 }
  0xee   :  { %v2242_v40 = vpop.f32.mrf.mxu0  ;;  %v2308_v45 = vpop.f32.mrf.mxu1  ;;  %2405 = vmatmul.mubr.msk.bf16.gmra.mxu0 %vm123_vm1, %v2881_v38  ;;  %2471 = vmatmul.mubr.msk.bf16.gmra.mxu1 %vm123_vm1, %v2881_v38 }
  0xef   :  { %597 = vst.msk [vmem:[%s4360_s3 + $0x98] sm:$0xff] %vm577_vm2, %v532_v33  ;;  %1027 = vst.msk [vmem:[%s4361_s4 + $0x98] sm:$0xff] %vm577_vm2, %v963_v34  ;;  %v530_v46 = vmax.f32 %v326_v14, 0.0  ;;  %v961_v51 = vmax.f32 %v757_v39, 0.0  ;;  %v347_v52 = vadd.f32 %v2242_v40, %v3000_v8  ;;  %v778_v55 = vadd.f32 %v2308_v45, %v3005_v9  ;;  %2408 = vmatprep.mubr.msk.bf16.mxu0 %vm123_vm1, %v2883_v41 }
  0xf0   :  { %2474 = vmatprep.mubr.msk.bf16.mxu1 %vm123_vm1, %v2883_v41  ;;  %v338_v38 = vpop.f32.mrf.mxu0  ;;  %v769_v56 = vpop.f32.mrf.mxu1 }
  0xf1   :  { %595 = vst.msk [vmem:[%s4360_s3 + $0x88] sm:$0xff] %vm577_vm2, %v530_v46  ;;  %1025 = vst.msk [vmem:[%s4361_s4 + $0x88] sm:$0xff] %vm577_vm2, %v961_v51  ;;  %v535_v57 = vmax.f32 %v347_v52, 0.0  ;;  %v966_v58 = vmax.f32 %v778_v55, 0.0  ;;  %v339_v59 = vadd.f32 %v3000_v8, %v338_v38  ;;  %v770_v60 = vadd.f32 %v3005_v9, %v769_v56 }
  0xf2   :  { %v2243_v61 = vpop.f32.mrf.mxu0  ;;  %v2309_v41 = vpop.f32.mrf.mxu1 }
  0xf3   :  { %600 = vst.msk [vmem:[%s4360_s3 + $0xb0] sm:$0xff] %vm577_vm2, %v535_v57  ;;  %1030 = vst.msk [vmem:[%s4361_s4 + $0xb0] sm:$0xff] %vm577_vm2, %v966_v58  ;;  %v533_v62 = vmax.f32 %v339_v59, 0.0  ;;  %v964_v63 = vmax.f32 %v770_v60, 0.0  ;;  %v350_v0 = vadd.f32 %v2243_v61, %v3000_v8  ;;  %v781_v20 = vadd.f32 %v2309_v41, %v3005_v9 }
  0xf4   :  { %v341_v1 = vpop.f32.mrf.mxu0  ;;  %v772_v2 = vpop.f32.mrf.mxu1 }
  0xf5   :  { %598 = vst.msk [vmem:[%s4360_s3 + $0xa0] sm:$0xff] %vm577_vm2, %v533_v62  ;;  %1028 = vst.msk [vmem:[%s4361_s4 + $0xa0] sm:$0xff] %vm577_vm2, %v964_v63  ;;  %v536_v3 = vmax.f32 %v350_v0, 0.0  ;;  %v967_v4 = vmax.f32 %v781_v20, 0.0  ;;  %v342_v7 = vadd.f32 %v3000_v8, %v341_v1  ;;  %v773_v5 = vadd.f32 %v3005_v9, %v772_v2 }
  0xf6   :  { %v2246_v23 = vpop.f32.mrf.mxu0  ;;  %v2312_v10 = vpop.f32.mrf.mxu1  ;;  %2409 = vmatmul.mubr.msk.bf16.gmra.mxu0 %vm123_vm1, %v2905_v48  ;;  %2475 = vmatmul.mubr.msk.bf16.gmra.mxu1 %vm123_vm1, %v2905_v48 }
  0xf7   :  { %601 = vst.msk [vmem:[%s4360_s3 + $0xb8] sm:$0xff] %vm577_vm2, %v536_v3  ;;  %1031 = vst.msk [vmem:[%s4361_s4 + $0xb8] sm:$0xff] %vm577_vm2, %v967_v4  ;;  %v534_v11 = vmax.f32 %v342_v7, 0.0  ;;  %v965_v12 = vmax.f32 %v773_v5, 0.0  ;;  %v363_v15 = vadd.f32 %v2246_v23, %v3000_v8  ;;  %v794_v17 = vadd.f32 %v2312_v10, %v3005_v9  ;;  %2412 = vmatprep.mubr.msk.bf16.mxu0 %vm123_vm1, %v2907_v49 }
  0xf8   :  { %2478 = vmatprep.mubr.msk.bf16.mxu1 %vm123_vm1, %v2907_v49  ;;  %v354_v48 = vpop.f32.mrf.mxu0  ;;  %v785_v18 = vpop.f32.mrf.mxu1 }
  0xf9   :  { %599 = vst.msk [vmem:[%s4360_s3 + $0xa8] sm:$0xff] %vm577_vm2, %v534_v11  ;;  %1029 = vst.msk [vmem:[%s4361_s4 + $0xa8] sm:$0xff] %vm577_vm2, %v965_v12  ;;  %v539_v6 = vmax.f32 %v363_v15, 0.0  ;;  %v970_v19 = vmax.f32 %v794_v17, 0.0  ;;  %v355_v24 = vadd.f32 %v3000_v8, %v354_v48  ;;  %v786_v25 = vadd.f32 %v3005_v9, %v785_v18 }
  0xfa   :  { %v2247_v26 = vpop.f32.mrf.mxu0  ;;  %v2313_v49 = vpop.f32.mrf.mxu1 }
  0xfb   :  { %604 = vst.msk [vmem:[%s4360_s3 + $0xd0] sm:$0xff] %vm577_vm2, %v539_v6  ;;  %1034 = vst.msk [vmem:[%s4361_s4 + $0xd0] sm:$0xff] %vm577_vm2, %v970_v19  ;;  %v537_v29 = vmax.f32 %v355_v24, 0.0  ;;  %v968_v32 = vmax.f32 %v786_v25, 0.0  ;;  %v366_v35 = vadd.f32 %v2247_v26, %v3000_v8  ;;  %v797_v36 = vadd.f32 %v2313_v49, %v3005_v9 }
  0xfc   :  { %v357_v37 = vpop.f32.mrf.mxu0  ;;  %v788_v30 = vpop.f32.mrf.mxu1 }
  0xfd   :  { %602 = vst.msk [vmem:[%s4360_s3 + $0xc0] sm:$0xff] %vm577_vm2, %v537_v29  ;;  %1032 = vst.msk [vmem:[%s4361_s4 + $0xc0] sm:$0xff] %vm577_vm2, %v968_v32  ;;  %v540_v42 = vmax.f32 %v366_v35, 0.0  ;;  %v971_v43 = vmax.f32 %v797_v36, 0.0  ;;  %v358_v44 = vadd.f32 %v3000_v8, %v357_v37  ;;  %v789_v47 = vadd.f32 %v3005_v9, %v788_v30 }
  0xfe   :  { %v2250_v50 = vpop.f32.mrf.mxu0  ;;  %v2316_v53 = vpop.f32.mrf.mxu1  ;;  %2413 = vmatmul.mubr.msk.bf16.gmra.mxu0 %vm123_vm1, %v2923_v54  ;;  %2479 = vmatmul.mubr.msk.bf16.gmra.mxu1 %vm123_vm1, %v2923_v54 }
  0xff   :  { %605 = vst.msk [vmem:[%s4360_s3 + $0xd8] sm:$0xff] %vm577_vm2, %v540_v42  ;;  %1035 = vst.msk [vmem:[%s4361_s4 + $0xd8] sm:$0xff] %vm577_vm2, %v971_v43  ;;  %v538_v31 = vmax.f32 %v358_v44, 0.0  ;;  %v969_v16 = vmax.f32 %v789_v47, 0.0  ;;  %v379_v13 = vadd.f32 %v2250_v50, %v3000_v8  ;;  %v810_v21 = vadd.f32 %v2316_v53, %v3005_v9 }
 0x100   :  { %v370_v22 = vpop.f32.mrf.mxu0  ;;  %v801_v27 = vpop.f32.mrf.mxu1 }
 0x101   :  { %603 = vst.msk [vmem:[%s4360_s3 + $0xc8] sm:$0xff] %vm577_vm2, %v538_v31  ;;  %1033 = vst.msk [vmem:[%s4361_s4 + $0xc8] sm:$0xff] %vm577_vm2, %v969_v16  ;;  %v543_v54 = vmax.f32 %v379_v13, 0.0  ;;  %v974_v28 = vmax.f32 %v810_v21, 0.0  ;;  %v371_v33 = vadd.f32 %v3000_v8, %v370_v22  ;;  %v802_v34 = vadd.f32 %v3005_v9, %v801_v27 }
 0x102   :  { %v2251_v14 = vpop.f32.mrf.mxu0  ;;  %v2317_v39 = vpop.f32.mrf.mxu1 }
 0x103   :  { %608 = vst.msk [vmem:[%s4360_s3 + $0xf0] sm:$0xff] %vm577_vm2, %v543_v54  ;;  %1038 = vst.msk [vmem:[%s4361_s4 + $0xf0] sm:$0xff] %vm577_vm2, %v974_v28  ;;  %v541_v40 = vmax.f32 %v371_v33, 0.0  ;;  %v972_v45 = vmax.f32 %v802_v34, 0.0  ;;  %v382_v46 = vadd.f32 %v2251_v14, %v3000_v8  ;;  %v813_v51 = vadd.f32 %v2317_v39, %v3005_v9 }
 0x104   :  { %v373_v52 = vpop.f32.mrf.mxu0  ;;  %v804_v55 = vpop.f32.mrf.mxu1 }
 0x105   :  { %606 = vst.msk [vmem:[%s4360_s3 + $0xe0] sm:$0xff] %vm577_vm2, %v541_v40  ;;  %1036 = vst.msk [vmem:[%s4361_s4 + $0xe0] sm:$0xff] %vm577_vm2, %v972_v45  ;;  %v544_v38 = vmax.f32 %v382_v46, 0.0  ;;  %v975_v56 = vmax.f32 %v813_v51, 0.0  ;;  %v374_v57 = vadd.f32 %v3000_v8, %v373_v52  ;;  %v805_v58 = vadd.f32 %v3005_v9, %v804_v55 }
 0x106   :  { %v2254_v59 = vpop.f32.mrf.mxu0  ;;  %v2320_v60 = vpop.f32.mrf.mxu1 }
 0x107   :  { %609 = vst.msk [vmem:[%s4360_s3 + $0xf8] sm:$0xff] %vm577_vm2, %v544_v38  ;;  %1039 = vst.msk [vmem:[%s4361_s4 + $0xf8] sm:$0xff] %vm577_vm2, %v975_v56  ;;  %v542_v61 = vmax.f32 %v374_v57, 0.0  ;;  %v973_v41 = vmax.f32 %v805_v58, 0.0  ;;  %v395_v62 = vadd.f32 %v2254_v59, %v3000_v8  ;;  %v826_v63 = vadd.f32 %v2320_v60, %v3005_v9 }
 0x108   :  { %v386_v0 = vpop.f32.mrf.mxu0  ;;  %v817_v20 = vpop.f32.mrf.mxu1 }
 0x109   :  { %607 = vst.msk [vmem:[%s4360_s3 + $0xe8] sm:$0xff] %vm577_vm2, %v542_v61  ;;  %1037 = vst.msk [vmem:[%s4361_s4 + $0xe8] sm:$0xff] %vm577_vm2, %v973_v41  ;;  %v547_v1 = vmax.f32 %v395_v62, 0.0  ;;  %v978_v2 = vmax.f32 %v826_v63, 0.0  ;;  %v387_v3 = vadd.f32 %v3000_v8, %v386_v0  ;;  %v818_v4 = vadd.f32 %v3005_v9, %v817_v20 }
 0x10a   :  { %v2255_v7 = vpop.f32.mrf.mxu0  ;;  %v2321_v5 = vpop.f32.mrf.mxu1 }
 0x10b   :  { %612 = vst.msk [vmem:[%s4360_s3 + $0x110] sm:$0xff] %vm577_vm2, %v547_v1  ;;  %1042 = vst.msk [vmem:[%s4361_s4 + $0x110] sm:$0xff] %vm577_vm2, %v978_v2  ;;  %v545_v23 = vmax.f32 %v387_v3, 0.0  ;;  %v976_v10 = vmax.f32 %v818_v4, 0.0  ;;  %v398_v11 = vadd.f32 %v2255_v7, %v3000_v8  ;;  %v829_v12 = vadd.f32 %v2321_v5, %v3005_v9 }
 0x10c   :  { %v389_v15 = vpop.f32.mrf.mxu0  ;;  %v820_v17 = vpop.f32.mrf.mxu1 }
 0x10d   :  { %610 = vst.msk [vmem:[%s4360_s3 + $0x100] sm:$0xff] %vm577_vm2, %v545_v23  ;;  %1040 = vst.msk [vmem:[%s4361_s4 + $0x100] sm:$0xff] %vm577_vm2, %v976_v10  ;;  %v548_v48 = vmax.f32 %v398_v11, 0.0  ;;  %v979_v18 = vmax.f32 %v829_v12, 0.0  ;;  %v390_v6 = vadd.f32 %v3000_v8, %v389_v15  ;;  %v821_v19 = vadd.f32 %v3005_v9, %v820_v17 }
 0x10e   :  { %v2258_v24 = vpop.f32.mrf.mxu0  ;;  %v2324_v25 = vpop.f32.mrf.mxu1 }
 0x10f   :  { %613 = vst.msk [vmem:[%s4360_s3 + $0x118] sm:$0xff] %vm577_vm2, %v548_v48  ;;  %1043 = vst.msk [vmem:[%s4361_s4 + $0x118] sm:$0xff] %vm577_vm2, %v979_v18  ;;  %v546_v26 = vmax.f32 %v390_v6, 0.0  ;;  %v977_v49 = vmax.f32 %v821_v19, 0.0  ;;  %v411_v29 = vadd.f32 %v2258_v24, %v3000_v8  ;;  %v842_v32 = vadd.f32 %v2324_v25, %v3005_v9 }
 0x110   :  { %v402_v35 = vpop.f32.mrf.mxu0  ;;  %v833_v36 = vpop.f32.mrf.mxu1 }
 0x111   :  { %611 = vst.msk [vmem:[%s4360_s3 + $0x108] sm:$0xff] %vm577_vm2, %v546_v26  ;;  %1041 = vst.msk [vmem:[%s4361_s4 + $0x108] sm:$0xff] %vm577_vm2, %v977_v49  ;;  %v551_v37 = vmax.f32 %v411_v29, 0.0  ;;  %v982_v30 = vmax.f32 %v842_v32, 0.0  ;;  %v403_v42 = vadd.f32 %v3000_v8, %v402_v35  ;;  %v834_v43 = vadd.f32 %v3005_v9, %v833_v36 }
 0x112   :  { %v2259_v44 = vpop.f32.mrf.mxu0  ;;  %v2325_v47 = vpop.f32.mrf.mxu1 }
 0x113   :  { %616 = vst.msk [vmem:[%s4360_s3 + $0x130] sm:$0xff] %vm577_vm2, %v551_v37  ;;  %1046 = vst.msk [vmem:[%s4361_s4 + $0x130] sm:$0xff] %vm577_vm2, %v982_v30  ;;  %v549_v50 = vmax.f32 %v403_v42, 0.0  ;;  %v980_v53 = vmax.f32 %v834_v43, 0.0  ;;  %v414_v31 = vadd.f32 %v2259_v44, %v3000_v8  ;;  %v845_v16 = vadd.f32 %v2325_v47, %v3005_v9 }
 0x114   :  { %v405_v13 = vpop.f32.mrf.mxu0  ;;  %v836_v21 = vpop.f32.mrf.mxu1 }
 0x115   :  { %614 = vst.msk [vmem:[%s4360_s3 + $0x120] sm:$0xff] %vm577_vm2, %v549_v50  ;;  %1044 = vst.msk [vmem:[%s4361_s4 + $0x120] sm:$0xff] %vm577_vm2, %v980_v53  ;;  %v552_v22 = vmax.f32 %v414_v31, 0.0  ;;  %v983_v27 = vmax.f32 %v845_v16, 0.0  ;;  %v406_v54 = vadd.f32 %v3000_v8, %v405_v13  ;;  %v837_v28 = vadd.f32 %v3005_v9, %v836_v21 }
 0x116   :  { %v2262_v33 = vpop.f32.mrf.mxu0  ;;  %v2328_v34 = vpop.f32.mrf.mxu1 }
 0x117   :  { %617 = vst.msk [vmem:[%s4360_s3 + $0x138] sm:$0xff] %vm577_vm2, %v552_v22  ;;  %1047 = vst.msk [vmem:[%s4361_s4 + $0x138] sm:$0xff] %vm577_vm2, %v983_v27  ;;  %v550_v14 = vmax.f32 %v406_v54, 0.0  ;;  %v981_v39 = vmax.f32 %v837_v28, 0.0  ;;  %v427_v40 = vadd.f32 %v2262_v33, %v3000_v8  ;;  %v858_v45 = vadd.f32 %v2328_v34, %v3005_v9 }
 0x118   :  { %v418_v46 = vpop.f32.mrf.mxu0  ;;  %v849_v51 = vpop.f32.mrf.mxu1 }
 0x119   :  { %615 = vst.msk [vmem:[%s4360_s3 + $0x128] sm:$0xff] %vm577_vm2, %v550_v14  ;;  %1045 = vst.msk [vmem:[%s4361_s4 + $0x128] sm:$0xff] %vm577_vm2, %v981_v39  ;;  %v555_v52 = vmax.f32 %v427_v40, 0.0  ;;  %v986_v55 = vmax.f32 %v858_v45, 0.0  ;;  %v419_v38 = vadd.f32 %v3000_v8, %v418_v46  ;;  %v850_v56 = vadd.f32 %v3005_v9, %v849_v51 }
 0x11a   :  { %v2263_v57 = vpop.f32.mrf.mxu0  ;;  %v2329_v58 = vpop.f32.mrf.mxu1 }
 0x11b   :  { %620 = vst.msk [vmem:[%s4360_s3 + $0x150] sm:$0xff] %vm577_vm2, %v555_v52  ;;  %1050 = vst.msk [vmem:[%s4361_s4 + $0x150] sm:$0xff] %vm577_vm2, %v986_v55  ;;  %v553_v59 = vmax.f32 %v419_v38, 0.0  ;;  %v984_v60 = vmax.f32 %v850_v56, 0.0  ;;  %v430_v61 = vadd.f32 %v2263_v57, %v3000_v8  ;;  %v861_v41 = vadd.f32 %v2329_v58, %v3005_v9 }
 0x11c   :  { %v421_v62 = vpop.f32.mrf.mxu0  ;;  %v852_v63 = vpop.f32.mrf.mxu1 }
 0x11d   :  { %618 = vst.msk [vmem:[%s4360_s3 + $0x140] sm:$0xff] %vm577_vm2, %v553_v59  ;;  %1048 = vst.msk [vmem:[%s4361_s4 + $0x140] sm:$0xff] %vm577_vm2, %v984_v60  ;;  %v556_v0 = vmax.f32 %v430_v61, 0.0  ;;  %v987_v20 = vmax.f32 %v861_v41, 0.0  ;;  %v422_v1 = vadd.f32 %v3000_v8, %v421_v62  ;;  %v853_v2 = vadd.f32 %v3005_v9, %v852_v63 }
 0x11e   :  { %v2266_v3 = vpop.f32.mrf.mxu0  ;;  %v2332_v4 = vpop.f32.mrf.mxu1 }
 0x11f   :  { %621 = vst.msk [vmem:[%s4360_s3 + $0x158] sm:$0xff] %vm577_vm2, %v556_v0  ;;  %1051 = vst.msk [vmem:[%s4361_s4 + $0x158] sm:$0xff] %vm577_vm2, %v987_v20  ;;  %v554_v7 = vmax.f32 %v422_v1, 0.0  ;;  %v985_v5 = vmax.f32 %v853_v2, 0.0  ;;  %v443_v23 = vadd.f32 %v2266_v3, %v3000_v8  ;;  %v874_v10 = vadd.f32 %v2332_v4, %v3005_v9 }
 0x120   :  { %v434_v11 = vpop.f32.mrf.mxu0  ;;  %v865_v12 = vpop.f32.mrf.mxu1 }
 0x121   :  { %619 = vst.msk [vmem:[%s4360_s3 + $0x148] sm:$0xff] %vm577_vm2, %v554_v7  ;;  %1049 = vst.msk [vmem:[%s4361_s4 + $0x148] sm:$0xff] %vm577_vm2, %v985_v5  ;;  %v559_v15 = vmax.f32 %v443_v23, 0.0  ;;  %v990_v17 = vmax.f32 %v874_v10, 0.0  ;;  %v435_v48 = vadd.f32 %v3000_v8, %v434_v11  ;;  %v866_v18 = vadd.f32 %v3005_v9, %v865_v12 }
 0x122   :  { %v2267_v6 = vpop.f32.mrf.mxu0  ;;  %v2333_v19 = vpop.f32.mrf.mxu1 }
 0x123   :  { %624 = vst.msk [vmem:[%s4360_s3 + $0x170] sm:$0xff] %vm577_vm2, %v559_v15  ;;  %1054 = vst.msk [vmem:[%s4361_s4 + $0x170] sm:$0xff] %vm577_vm2, %v990_v17  ;;  %v557_v24 = vmax.f32 %v435_v48, 0.0  ;;  %v988_v25 = vmax.f32 %v866_v18, 0.0  ;;  %v446_v26 = vadd.f32 %v2267_v6, %v3000_v8  ;;  %v877_v49 = vadd.f32 %v2333_v19, %v3005_v9 }
 0x124   :  { %v437_v29 = vpop.f32.mrf.mxu0  ;;  %v868_v32 = vpop.f32.mrf.mxu1 }
 0x125   :  { %622 = vst.msk [vmem:[%s4360_s3 + $0x160] sm:$0xff] %vm577_vm2, %v557_v24  ;;  %1052 = vst.msk [vmem:[%s4361_s4 + $0x160] sm:$0xff] %vm577_vm2, %v988_v25  ;;  %v560_v35 = vmax.f32 %v446_v26, 0.0  ;;  %v991_v36 = vmax.f32 %v877_v49, 0.0  ;;  %v438_v37 = vadd.f32 %v3000_v8, %v437_v29  ;;  %v869_v30 = vadd.f32 %v3005_v9, %v868_v32 }
 0x126   :  { %v2270_v42 = vpop.f32.mrf.mxu0  ;;  %v2336_v43 = vpop.f32.mrf.mxu1 }
 0x127   :  { %625 = vst.msk [vmem:[%s4360_s3 + $0x178] sm:$0xff] %vm577_vm2, %v560_v35  ;;  %1055 = vst.msk [vmem:[%s4361_s4 + $0x178] sm:$0xff] %vm577_vm2, %v991_v36  ;;  %v558_v44 = vmax.f32 %v438_v37, 0.0  ;;  %v989_v47 = vmax.f32 %v869_v30, 0.0  ;;  %v459_v50 = vadd.f32 %v2270_v42, %v3000_v8  ;;  %v890_v53 = vadd.f32 %v2336_v43, %v3005_v9 }
 0x128   :  { %v450_v31 = vpop.f32.mrf.mxu0  ;;  %v881_v16 = vpop.f32.mrf.mxu1 }
 0x129   :  { %623 = vst.msk [vmem:[%s4360_s3 + $0x168] sm:$0xff] %vm577_vm2, %v558_v44  ;;  %1053 = vst.msk [vmem:[%s4361_s4 + $0x168] sm:$0xff] %vm577_vm2, %v989_v47  ;;  %v563_v13 = vmax.f32 %v459_v50, 0.0  ;;  %v994_v21 = vmax.f32 %v890_v53, 0.0  ;;  %v451_v22 = vadd.f32 %v3000_v8, %v450_v31  ;;  %v882_v27 = vadd.f32 %v3005_v9, %v881_v16 }
 0x12a   :  { %v2271_v54 = vpop.f32.mrf.mxu0  ;;  %v2337_v28 = vpop.f32.mrf.mxu1 }
 0x12b   :  { %628 = vst.msk [vmem:[%s4360_s3 + $0x190] sm:$0xff] %vm577_vm2, %v563_v13  ;;  %1058 = vst.msk [vmem:[%s4361_s4 + $0x190] sm:$0xff] %vm577_vm2, %v994_v21  ;;  %v561_v33 = vmax.f32 %v451_v22, 0.0  ;;  %v992_v34 = vmax.f32 %v882_v27, 0.0  ;;  %v462_v14 = vadd.f32 %v2271_v54, %v3000_v8  ;;  %v893_v39 = vadd.f32 %v2337_v28, %v3005_v9 }
 0x12c   :  { %v453_v40 = vpop.f32.mrf.mxu0  ;;  %v884_v45 = vpop.f32.mrf.mxu1 }
 0x12d   :  { %626 = vst.msk [vmem:[%s4360_s3 + $0x180] sm:$0xff] %vm577_vm2, %v561_v33  ;;  %1056 = vst.msk [vmem:[%s4361_s4 + $0x180] sm:$0xff] %vm577_vm2, %v992_v34  ;;  %v564_v46 = vmax.f32 %v462_v14, 0.0  ;;  %v995_v51 = vmax.f32 %v893_v39, 0.0  ;;  %v454_v52 = vadd.f32 %v3000_v8, %v453_v40  ;;  %v885_v55 = vadd.f32 %v3005_v9, %v884_v45 }
 0x12e   :  { %v2274_v38 = vpop.f32.mrf.mxu0  ;;  %v2340_v56 = vpop.f32.mrf.mxu1 }
 0x12f   :  { %629 = vst.msk [vmem:[%s4360_s3 + $0x198] sm:$0xff] %vm577_vm2, %v564_v46  ;;  %1059 = vst.msk [vmem:[%s4361_s4 + $0x198] sm:$0xff] %vm577_vm2, %v995_v51  ;;  %v562_v57 = vmax.f32 %v454_v52, 0.0  ;;  %v993_v58 = vmax.f32 %v885_v55, 0.0  ;;  %v475_v59 = vadd.f32 %v2274_v38, %v3000_v8  ;;  %v906_v60 = vadd.f32 %v2340_v56, %v3005_v9 }
 0x130   :  { %v466_v61 = vpop.f32.mrf.mxu0  ;;  %v897_v41 = vpop.f32.mrf.mxu1 }
 0x131   :  { %627 = vst.msk [vmem:[%s4360_s3 + $0x188] sm:$0xff] %vm577_vm2, %v562_v57  ;;  %1057 = vst.msk [vmem:[%s4361_s4 + $0x188] sm:$0xff] %vm577_vm2, %v993_v58  ;;  %v567_v62 = vmax.f32 %v475_v59, 0.0  ;;  %v998_v63 = vmax.f32 %v906_v60, 0.0  ;;  %v467_v0 = vadd.f32 %v3000_v8, %v466_v61  ;;  %v898_v20 = vadd.f32 %v3005_v9, %v897_v41  ;;  %v3684_v61 = vld [vmem:[%s4359_s2 + $0x2] ss:$0 sm:$0xff] }
 0x132   :  { %v2275_v1 = vpop.f32.mrf.mxu0  ;;  %v2341_v2 = vpop.f32.mrf.mxu1  ;;  %v3689_v41 = vld [vmem:[%s4359_s2 + $0x3] ss:$0 sm:$0xff] }
 0x133   :  { %632 = vst.msk [vmem:[%s4360_s3 + $0x1b0] sm:$0xff] %vm577_vm2, %v567_v62  ;;  %1062 = vst.msk [vmem:[%s4361_s4 + $0x1b0] sm:$0xff] %vm577_vm2, %v998_v63  ;;  %v565_v3 = vmax.f32 %v467_v0, 0.0  ;;  %v996_v4 = vmax.f32 %v898_v20, 0.0  ;;  %v478_v7 = vadd.f32 %v2275_v1, %v3000_v8  ;;  %v909_v5 = vadd.f32 %v2341_v2, %v3005_v9 }
 0x134   :  { %v469_v23 = vpop.f32.mrf.mxu0  ;;  %v900_v10 = vpop.f32.mrf.mxu1 }
 0x135   :  { %630 = vst.msk [vmem:[%s4360_s3 + $0x1a0] sm:$0xff] %vm577_vm2, %v565_v3  ;;  %1060 = vst.msk [vmem:[%s4361_s4 + $0x1a0] sm:$0xff] %vm577_vm2, %v996_v4  ;;  %v568_v11 = vmax.f32 %v478_v7, 0.0  ;;  %v999_v12 = vmax.f32 %v909_v5, 0.0  ;;  %v470_v15 = vadd.f32 %v3000_v8, %v469_v23  ;;  %v901_v17 = vadd.f32 %v3005_v9, %v900_v10 }
 0x136   :  { %v2278_v48 = vpop.f32.mrf.mxu0  ;;  %v2344_v18 = vpop.f32.mrf.mxu1 }
 0x137   :  { %633 = vst.msk [vmem:[%s4360_s3 + $0x1b8] sm:$0xff] %vm577_vm2, %v568_v11  ;;  %1063 = vst.msk [vmem:[%s4361_s4 + $0x1b8] sm:$0xff] %vm577_vm2, %v999_v12  ;;  %v566_v6 = vmax.f32 %v470_v15, 0.0  ;;  %v997_v19 = vmax.f32 %v901_v17, 0.0  ;;  %v491_v24 = vadd.f32 %v2278_v48, %v3000_v8  ;;  %v922_v25 = vadd.f32 %v2344_v18, %v3005_v9 }
 0x138   :  { %v482_v26 = vpop.f32.mrf.mxu0  ;;  %v913_v49 = vpop.f32.mrf.mxu1 }
 0x139   :  { %631 = vst.msk [vmem:[%s4360_s3 + $0x1a8] sm:$0xff] %vm577_vm2, %v566_v6  ;;  %1061 = vst.msk [vmem:[%s4361_s4 + $0x1a8] sm:$0xff] %vm577_vm2, %v997_v19  ;;  %v571_v29 = vmax.f32 %v491_v24, 0.0  ;;  %v1002_v32 = vmax.f32 %v922_v25, 0.0  ;;  %v483_v35 = vadd.f32 %v3000_v8, %v482_v26  ;;  %v914_v36 = vadd.f32 %v3005_v9, %v913_v49 }
 0x13a   :  { %v2279_v37 = vpop.f32.mrf.mxu0  ;;  %v2345_v30 = vpop.f32.mrf.mxu1 }
 0x13b   :  { %636 = vst.msk [vmem:[%s4360_s3 + $0x1d0] sm:$0xff] %vm577_vm2, %v571_v29  ;;  %1066 = vst.msk [vmem:[%s4361_s4 + $0x1d0] sm:$0xff] %vm577_vm2, %v1002_v32  ;;  %v569_v42 = vmax.f32 %v483_v35, 0.0  ;;  %v1000_v43 = vmax.f32 %v914_v36, 0.0  ;;  %v494_v44 = vadd.f32 %v2279_v37, %v3000_v8  ;;  %v925_v47 = vadd.f32 %v2345_v30, %v3005_v9 }
 0x13c   :  { %v485_v50 = vpop.f32.mrf.mxu0  ;;  %v916_v53 = vpop.f32.mrf.mxu1 }
 0x13d   :  { %634 = vst.msk [vmem:[%s4360_s3 + $0x1c0] sm:$0xff] %vm577_vm2, %v569_v42  ;;  %1064 = vst.msk [vmem:[%s4361_s4 + $0x1c0] sm:$0xff] %vm577_vm2, %v1000_v43  ;;  %v572_v31 = vmax.f32 %v494_v44, 0.0  ;;  %v1003_v16 = vmax.f32 %v925_v47, 0.0  ;;  %v486_v13 = vadd.f32 %v3000_v8, %v485_v50  ;;  %v917_v21 = vadd.f32 %v3005_v9, %v916_v53  ;;  %v2486_v8 = vld [vmem:[%s4359_s2] ss:$0 sm:$0xff] }
 0x13e   :  { %v2282_v22 = vpop.f32.mrf.mxu0  ;;  %v2348_v27 = vpop.f32.mrf.mxu1  ;;  %v2487_v9 = vld [vmem:[%s4359_s2 + $0x1] ss:$0 sm:$0xff] }
 0x13f   :  { %637 = vst.msk [vmem:[%s4360_s3 + $0x1d8] sm:$0xff] %vm577_vm2, %v572_v31  ;;  %1067 = vst.msk [vmem:[%s4361_s4 + $0x1d8] sm:$0xff] %vm577_vm2, %v1003_v16  ;;  %v570_v54 = vmax.f32 %v486_v13, 0.0  ;;  %v1001_v28 = vmax.f32 %v917_v21, 0.0  ;;  %v507_v33 = vadd.f32 %v2486_v8, %v2282_v22  ;;  %v938_v34 = vadd.f32 %v2487_v9, %v2348_v27 }
 0x140   :  { %v498_v14 = vpop.f32.mrf.mxu0  ;;  %v929_v39 = vpop.f32.mrf.mxu1 }
 0x141   :  { %635 = vst.msk [vmem:[%s4360_s3 + $0x1c8] sm:$0xff] %vm577_vm2, %v570_v54  ;;  %1065 = vst.msk [vmem:[%s4361_s4 + $0x1c8] sm:$0xff] %vm577_vm2, %v1001_v28  ;;  %v575_v40 = vmax.f32 %v507_v33, 0.0  ;;  %v1006_v45 = vmax.f32 %v938_v34, 0.0  ;;  %v499_v46 = vadd.f32 %v2486_v8, %v498_v14  ;;  %v930_v51 = vadd.f32 %v2487_v9, %v929_v39 }
 0x142   :  { %v2283_v52 = vpop.f32.mrf.mxu0  ;;  %v2349_v55 = vpop.f32.mrf.mxu1 }
 0x143   :  { %640 = vst.msk [vmem:[%s4360_s3 + $0x1f0] sm:$0xff] %vm577_vm2, %v575_v40  ;;  %1070 = vst.msk [vmem:[%s4361_s4 + $0x1f0] sm:$0xff] %vm577_vm2, %v1006_v45  ;;  %v573_v38 = vmax.f32 %v499_v46, 0.0  ;;  %v1004_v56 = vmax.f32 %v930_v51, 0.0  ;;  %v510_v57 = vadd.f32 %v2486_v8, %v2283_v52  ;;  %v941_v58 = vadd.f32 %v2487_v9, %v2349_v55 }
 0x144   :  { %v501_v59 = vpop.f32.mrf.mxu0  ;;  %v932_v60 = vpop.f32.mrf.mxu1 }
 0x145   :  { %638 = vst.msk [vmem:[%s4360_s3 + $0x1e0] sm:$0xff] %vm577_vm2, %v573_v38  ;;  %1068 = vst.msk [vmem:[%s4361_s4 + $0x1e0] sm:$0xff] %vm577_vm2, %v1004_v56  ;;  %v576_v62 = vmax.f32 %v510_v57, 0.0  ;;  %v1007_v63 = vmax.f32 %v941_v58, 0.0  ;;  %v502_v0 = vadd.f32 %v2486_v8, %v501_v59  ;;  %v933_v20 = vadd.f32 %v2487_v9, %v932_v60 }
 0x146   :  { %v2354_v1 = vpop.f32.mrf.mxu0  ;;  %v2420_v2 = vpop.f32.mrf.mxu1 }
 0x147   :  { %641 = vst.msk [vmem:[%s4360_s3 + $0x1f8] sm:$0xff] %vm577_vm2, %v576_v62  ;;  %1071 = vst.msk [vmem:[%s4361_s4 + $0x1f8] sm:$0xff] %vm577_vm2, %v1007_v63  ;;  %v574_v3 = vmax.f32 %v502_v0, 0.0  ;;  %v1005_v4 = vmax.f32 %v933_v20, 0.0  ;;  %v1128_v7 = vadd.f32 %v2354_v1, %v3684_v61  ;;  %v1558_v5 = vadd.f32 %v2420_v2, %v3689_v41 }
 0x148   :  { %v1119_v23 = vpop.f32.mrf.mxu0  ;;  %v1549_v10 = vpop.f32.mrf.mxu1 }
 0x149   :  { %639 = vst.msk [vmem:[%s4360_s3 + $0x1e8] sm:$0xff] %vm577_vm2, %v574_v3  ;;  %1069 = vst.msk [vmem:[%s4361_s4 + $0x1e8] sm:$0xff] %vm577_vm2, %v1005_v4  ;;  %v1376_v11 = vmax.f32 %v1128_v7, 0.0  ;;  %v1806_v12 = vmax.f32 %v1558_v5, 0.0  ;;  %v1120_v15 = vadd.f32 %v3684_v61, %v1119_v23  ;;  %v1550_v17 = vadd.f32 %v3689_v41, %v1549_v10 }
 0x14a   :  { %v2355_v48 = vpop.f32.mrf.mxu0  ;;  %v2421_v18 = vpop.f32.mrf.mxu1 }
 0x14b   :  { %1440 = vst.msk [vmem:[%s4362_s5 + $0x10] sm:$0xff] %vm577_vm2, %v1376_v11  ;;  %1870 = vst.msk [vmem:[%s4363_s6 + $0x10] sm:$0xff] %vm577_vm2, %v1806_v12  ;;  %v1374_v6 = vmax.f32 %v1120_v15, 0.0  ;;  %v1804_v19 = vmax.f32 %v1550_v17, 0.0  ;;  %v1131_v24 = vadd.f32 %v2355_v48, %v3684_v61  ;;  %v1561_v25 = vadd.f32 %v2421_v18, %v3689_v41 }
 0x14c   :  { %v1122_v26 = vpop.f32.mrf.mxu0  ;;  %v1552_v49 = vpop.f32.mrf.mxu1 }
 0x14d   :  { %1438 = vst.msk [vmem:[%s4362_s5] sm:$0xff] %vm577_vm2, %v1374_v6  ;;  %1868 = vst.msk [vmem:[%s4363_s6] sm:$0xff] %vm577_vm2, %v1804_v19  ;;  %v1377_v29 = vmax.f32 %v1131_v24, 0.0  ;;  %v1807_v32 = vmax.f32 %v1561_v25, 0.0  ;;  %v1123_v35 = vadd.f32 %v3684_v61, %v1122_v26  ;;  %v1553_v36 = vadd.f32 %v3689_v41, %v1552_v49 }
 0x14e   :  { %v2358_v37 = vpop.f32.mrf.mxu0  ;;  %v2424_v30 = vpop.f32.mrf.mxu1 }
 0x14f   :  { %1441 = vst.msk [vmem:[%s4362_s5 + $0x18] sm:$0xff] %vm577_vm2, %v1377_v29  ;;  %1871 = vst.msk [vmem:[%s4363_s6 + $0x18] sm:$0xff] %vm577_vm2, %v1807_v32  ;;  %v1375_v42 = vmax.f32 %v1123_v35, 0.0  ;;  %v1805_v43 = vmax.f32 %v1553_v36, 0.0  ;;  %v1144_v44 = vadd.f32 %v2358_v37, %v3684_v61  ;;  %v1574_v47 = vadd.f32 %v2424_v30, %v3689_v41 }
 0x150   :  { %v1135_v50 = vpop.f32.mrf.mxu0  ;;  %v1565_v53 = vpop.f32.mrf.mxu1 }
 0x151   :  { %1439 = vst.msk [vmem:[%s4362_s5 + $0x8] sm:$0xff] %vm577_vm2, %v1375_v42  ;;  %1869 = vst.msk [vmem:[%s4363_s6 + $0x8] sm:$0xff] %vm577_vm2, %v1805_v43  ;;  %v1380_v31 = vmax.f32 %v1144_v44, 0.0  ;;  %v1810_v16 = vmax.f32 %v1574_v47, 0.0  ;;  %v1136_v13 = vadd.f32 %v3684_v61, %v1135_v50  ;;  %v1566_v21 = vadd.f32 %v3689_v41, %v1565_v53 }
 0x152   :  { %v2359_v22 = vpop.f32.mrf.mxu0  ;;  %v2425_v27 = vpop.f32.mrf.mxu1 }
 0x153   :  { %1444 = vst.msk [vmem:[%s4362_s5 + $0x30] sm:$0xff] %vm577_vm2, %v1380_v31  ;;  %1874 = vst.msk [vmem:[%s4363_s6 + $0x30] sm:$0xff] %vm577_vm2, %v1810_v16  ;;  %v1378_v54 = vmax.f32 %v1136_v13, 0.0  ;;  %v1808_v28 = vmax.f32 %v1566_v21, 0.0  ;;  %v1147_v8 = vadd.f32 %v2359_v22, %v3684_v61  ;;  %v1577_v33 = vadd.f32 %v2425_v27, %v3689_v41 }
 0x154   :  { %v1138_v9 = vpop.f32.mrf.mxu0  ;;  %v1568_v34 = vpop.f32.mrf.mxu1 }
 0x155   :  { %1442 = vst.msk [vmem:[%s4362_s5 + $0x20] sm:$0xff] %vm577_vm2, %v1378_v54  ;;  %1872 = vst.msk [vmem:[%s4363_s6 + $0x20] sm:$0xff] %vm577_vm2, %v1808_v28  ;;  %v1381_v14 = vmax.f32 %v1147_v8, 0.0  ;;  %v1811_v39 = vmax.f32 %v1577_v33, 0.0  ;;  %v1139_v40 = vadd.f32 %v3684_v61, %v1138_v9  ;;  %v1569_v45 = vadd.f32 %v3689_v41, %v1568_v34 }
 0x156   :  { %v2362_v46 = vpop.f32.mrf.mxu0  ;;  %v2428_v51 = vpop.f32.mrf.mxu1 }
 0x157   :  { %1445 = vst.msk [vmem:[%s4362_s5 + $0x38] sm:$0xff] %vm577_vm2, %v1381_v14  ;;  %1875 = vst.msk [vmem:[%s4363_s6 + $0x38] sm:$0xff] %vm577_vm2, %v1811_v39  ;;  %v1379_v52 = vmax.f32 %v1139_v40, 0.0  ;;  %v1809_v55 = vmax.f32 %v1569_v45, 0.0  ;;  %v1160_v38 = vadd.f32 %v2362_v46, %v3684_v61  ;;  %v1590_v56 = vadd.f32 %v2428_v51, %v3689_v41 }
 0x158   :  { %v1151_v57 = vpop.f32.mrf.mxu0  ;;  %v1581_v58 = vpop.f32.mrf.mxu1 }
 0x159   :  { %1443 = vst.msk [vmem:[%s4362_s5 + $0x28] sm:$0xff] %vm577_vm2, %v1379_v52  ;;  %1873 = vst.msk [vmem:[%s4363_s6 + $0x28] sm:$0xff] %vm577_vm2, %v1809_v55  ;;  %v1384_v59 = vmax.f32 %v1160_v38, 0.0  ;;  %v1814_v60 = vmax.f32 %v1590_v56, 0.0  ;;  %v1152_v62 = vadd.f32 %v3684_v61, %v1151_v57  ;;  %v1582_v63 = vadd.f32 %v3689_v41, %v1581_v58 }
 0x15a   :  { %v2363_v0 = vpop.f32.mrf.mxu0  ;;  %v2429_v20 = vpop.f32.mrf.mxu1 }
 0x15b   :  { %1448 = vst.msk [vmem:[%s4362_s5 + $0x50] sm:$0xff] %vm577_vm2, %v1384_v59  ;;  %1878 = vst.msk [vmem:[%s4363_s6 + $0x50] sm:$0xff] %vm577_vm2, %v1814_v60  ;;  %v1382_v1 = vmax.f32 %v1152_v62, 0.0  ;;  %v1812_v2 = vmax.f32 %v1582_v63, 0.0  ;;  %v1163_v3 = vadd.f32 %v2363_v0, %v3684_v61  ;;  %v1593_v4 = vadd.f32 %v2429_v20, %v3689_v41 }
 0x15c   :  { %v1154_v7 = vpop.f32.mrf.mxu0  ;;  %v1584_v5 = vpop.f32.mrf.mxu1 }
 0x15d   :  { %1446 = vst.msk [vmem:[%s4362_s5 + $0x40] sm:$0xff] %vm577_vm2, %v1382_v1  ;;  %1876 = vst.msk [vmem:[%s4363_s6 + $0x40] sm:$0xff] %vm577_vm2, %v1812_v2  ;;  %v1385_v23 = vmax.f32 %v1163_v3, 0.0  ;;  %v1815_v10 = vmax.f32 %v1593_v4, 0.0  ;;  %v1155_v11 = vadd.f32 %v3684_v61, %v1154_v7  ;;  %v1585_v12 = vadd.f32 %v3689_v41, %v1584_v5 }
 0x15e   :  { %v2366_v15 = vpop.f32.mrf.mxu0  ;;  %v2432_v17 = vpop.f32.mrf.mxu1 }
 0x15f   :  { %1449 = vst.msk [vmem:[%s4362_s5 + $0x58] sm:$0xff] %vm577_vm2, %v1385_v23  ;;  %1879 = vst.msk [vmem:[%s4363_s6 + $0x58] sm:$0xff] %vm577_vm2, %v1815_v10  ;;  %v1383_v48 = vmax.f32 %v1155_v11, 0.0  ;;  %v1813_v18 = vmax.f32 %v1585_v12, 0.0  ;;  %v1176_v6 = vadd.f32 %v2366_v15, %v3684_v61  ;;  %v1606_v19 = vadd.f32 %v2432_v17, %v3689_v41 }
 0x160   :  { %v1167_v24 = vpop.f32.mrf.mxu0  ;;  %v1597_v25 = vpop.f32.mrf.mxu1 }
 0x161   :  { %1447 = vst.msk [vmem:[%s4362_s5 + $0x48] sm:$0xff] %vm577_vm2, %v1383_v48  ;;  %1877 = vst.msk [vmem:[%s4363_s6 + $0x48] sm:$0xff] %vm577_vm2, %v1813_v18  ;;  %v1388_v26 = vmax.f32 %v1176_v6, 0.0  ;;  %v1818_v49 = vmax.f32 %v1606_v19, 0.0  ;;  %v1168_v29 = vadd.f32 %v3684_v61, %v1167_v24  ;;  %v1598_v32 = vadd.f32 %v3689_v41, %v1597_v25 }
 0x162   :  { %v2367_v35 = vpop.f32.mrf.mxu0  ;;  %v2433_v36 = vpop.f32.mrf.mxu1 }
 0x163   :  { %1452 = vst.msk [vmem:[%s4362_s5 + $0x70] sm:$0xff] %vm577_vm2, %v1388_v26  ;;  %1882 = vst.msk [vmem:[%s4363_s6 + $0x70] sm:$0xff] %vm577_vm2, %v1818_v49  ;;  %v1386_v37 = vmax.f32 %v1168_v29, 0.0  ;;  %v1816_v30 = vmax.f32 %v1598_v32, 0.0  ;;  %v1179_v42 = vadd.f32 %v2367_v35, %v3684_v61  ;;  %v1609_v43 = vadd.f32 %v2433_v36, %v3689_v41 }
 0x164   :  { %v1170_v44 = vpop.f32.mrf.mxu0  ;;  %v1600_v47 = vpop.f32.mrf.mxu1 }
 0x165   :  { %1450 = vst.msk [vmem:[%s4362_s5 + $0x60] sm:$0xff] %vm577_vm2, %v1386_v37  ;;  %1880 = vst.msk [vmem:[%s4363_s6 + $0x60] sm:$0xff] %vm577_vm2, %v1816_v30  ;;  %v1389_v50 = vmax.f32 %v1179_v42, 0.0  ;;  %v1819_v53 = vmax.f32 %v1609_v43, 0.0  ;;  %v1171_v31 = vadd.f32 %v3684_v61, %v1170_v44  ;;  %v1601_v16 = vadd.f32 %v3689_v41, %v1600_v47 }
 0x166   :  { %v2370_v13 = vpop.f32.mrf.mxu0  ;;  %v2436_v21 = vpop.f32.mrf.mxu1 }
 0x167   :  { %1453 = vst.msk [vmem:[%s4362_s5 + $0x78] sm:$0xff] %vm577_vm2, %v1389_v50  ;;  %1883 = vst.msk [vmem:[%s4363_s6 + $0x78] sm:$0xff] %vm577_vm2, %v1819_v53  ;;  %v1387_v22 = vmax.f32 %v1171_v31, 0.0  ;;  %v1817_v27 = vmax.f32 %v1601_v16, 0.0  ;;  %v1192_v54 = vadd.f32 %v2370_v13, %v3684_v61  ;;  %v1622_v28 = vadd.f32 %v2436_v21, %v3689_v41 }
 0x168   :  { %v1183_v8 = vpop.f32.mrf.mxu0  ;;  %v1613_v33 = vpop.f32.mrf.mxu1 }
 0x169   :  { %1451 = vst.msk [vmem:[%s4362_s5 + $0x68] sm:$0xff] %vm577_vm2, %v1387_v22  ;;  %1881 = vst.msk [vmem:[%s4363_s6 + $0x68] sm:$0xff] %vm577_vm2, %v1817_v27  ;;  %v1392_v9 = vmax.f32 %v1192_v54, 0.0  ;;  %v1822_v34 = vmax.f32 %v1622_v28, 0.0  ;;  %v1184_v14 = vadd.f32 %v3684_v61, %v1183_v8  ;;  %v1614_v39 = vadd.f32 %v3689_v41, %v1613_v33 }
 0x16a   :  { %v2371_v40 = vpop.f32.mrf.mxu0  ;;  %v2437_v45 = vpop.f32.mrf.mxu1 }
 0x16b   :  { %1456 = vst.msk [vmem:[%s4362_s5 + $0x90] sm:$0xff] %vm577_vm2, %v1392_v9  ;;  %1886 = vst.msk [vmem:[%s4363_s6 + $0x90] sm:$0xff] %vm577_vm2, %v1822_v34  ;;  %v1390_v46 = vmax.f32 %v1184_v14, 0.0  ;;  %v1820_v51 = vmax.f32 %v1614_v39, 0.0  ;;  %v1195_v52 = vadd.f32 %v2371_v40, %v3684_v61  ;;  %v1625_v55 = vadd.f32 %v2437_v45, %v3689_v41 }
 0x16c   :  { %v1186_v38 = vpop.f32.mrf.mxu0  ;;  %v1616_v56 = vpop.f32.mrf.mxu1 }
 0x16d   :  { %1454 = vst.msk [vmem:[%s4362_s5 + $0x80] sm:$0xff] %vm577_vm2, %v1390_v46  ;;  %1884 = vst.msk [vmem:[%s4363_s6 + $0x80] sm:$0xff] %vm577_vm2, %v1820_v51  ;;  %v1393_v57 = vmax.f32 %v1195_v52, 0.0  ;;  %v1823_v58 = vmax.f32 %v1625_v55, 0.0  ;;  %v1187_v59 = vadd.f32 %v3684_v61, %v1186_v38  ;;  %v1617_v60 = vadd.f32 %v3689_v41, %v1616_v56 }
 0x16e   :  { %v2374_v62 = vpop.f32.mrf.mxu0  ;;  %v2440_v63 = vpop.f32.mrf.mxu1 }
 0x16f   :  { %1457 = vst.msk [vmem:[%s4362_s5 + $0x98] sm:$0xff] %vm577_vm2, %v1393_v57  ;;  %1887 = vst.msk [vmem:[%s4363_s6 + $0x98] sm:$0xff] %vm577_vm2, %v1823_v58  ;;  %v1391_v0 = vmax.f32 %v1187_v59, 0.0  ;;  %v1821_v20 = vmax.f32 %v1617_v60, 0.0  ;;  %v1208_v1 = vadd.f32 %v2374_v62, %v3684_v61  ;;  %v1638_v2 = vadd.f32 %v2440_v63, %v3689_v41 }
 0x170   :  { %v1199_v3 = vpop.f32.mrf.mxu0  ;;  %v1629_v4 = vpop.f32.mrf.mxu1 }
 0x171   :  { %1455 = vst.msk [vmem:[%s4362_s5 + $0x88] sm:$0xff] %vm577_vm2, %v1391_v0  ;;  %1885 = vst.msk [vmem:[%s4363_s6 + $0x88] sm:$0xff] %vm577_vm2, %v1821_v20  ;;  %v1396_v7 = vmax.f32 %v1208_v1, 0.0  ;;  %v1826_v5 = vmax.f32 %v1638_v2, 0.0  ;;  %v1200_v23 = vadd.f32 %v3684_v61, %v1199_v3  ;;  %v1630_v10 = vadd.f32 %v3689_v41, %v1629_v4 }
 0x172   :  { %v2375_v11 = vpop.f32.mrf.mxu0  ;;  %v2441_v12 = vpop.f32.mrf.mxu1 }
 0x173   :  { %1460 = vst.msk [vmem:[%s4362_s5 + $0xb0] sm:$0xff] %vm577_vm2, %v1396_v7  ;;  %1890 = vst.msk [vmem:[%s4363_s6 + $0xb0] sm:$0xff] %vm577_vm2, %v1826_v5  ;;  %v1394_v15 = vmax.f32 %v1200_v23, 0.0  ;;  %v1824_v17 = vmax.f32 %v1630_v10, 0.0  ;;  %v1211_v48 = vadd.f32 %v2375_v11, %v3684_v61  ;;  %v1641_v18 = vadd.f32 %v2441_v12, %v3689_v41 }
 0x174   :  { %v1202_v6 = vpop.f32.mrf.mxu0  ;;  %v1632_v19 = vpop.f32.mrf.mxu1 }
 0x175   :  { %1458 = vst.msk [vmem:[%s4362_s5 + $0xa0] sm:$0xff] %vm577_vm2, %v1394_v15  ;;  %1888 = vst.msk [vmem:[%s4363_s6 + $0xa0] sm:$0xff] %vm577_vm2, %v1824_v17  ;;  %v1397_v24 = vmax.f32 %v1211_v48, 0.0  ;;  %v1827_v25 = vmax.f32 %v1641_v18, 0.0  ;;  %v1203_v26 = vadd.f32 %v3684_v61, %v1202_v6  ;;  %v1633_v49 = vadd.f32 %v3689_v41, %v1632_v19 }
 0x176   :  { %v2378_v29 = vpop.f32.mrf.mxu0  ;;  %v2444_v32 = vpop.f32.mrf.mxu1 }
 0x177   :  { %1461 = vst.msk [vmem:[%s4362_s5 + $0xb8] sm:$0xff] %vm577_vm2, %v1397_v24  ;;  %1891 = vst.msk [vmem:[%s4363_s6 + $0xb8] sm:$0xff] %vm577_vm2, %v1827_v25  ;;  %v1395_v35 = vmax.f32 %v1203_v26, 0.0  ;;  %v1825_v36 = vmax.f32 %v1633_v49, 0.0  ;;  %v1224_v37 = vadd.f32 %v2378_v29, %v3684_v61  ;;  %v1654_v30 = vadd.f32 %v2444_v32, %v3689_v41 }
 0x178   :  { %v1215_v42 = vpop.f32.mrf.mxu0  ;;  %v1645_v43 = vpop.f32.mrf.mxu1 }
 0x179   :  { %1459 = vst.msk [vmem:[%s4362_s5 + $0xa8] sm:$0xff] %vm577_vm2, %v1395_v35  ;;  %1889 = vst.msk [vmem:[%s4363_s6 + $0xa8] sm:$0xff] %vm577_vm2, %v1825_v36  ;;  %v1400_v44 = vmax.f32 %v1224_v37, 0.0  ;;  %v1830_v47 = vmax.f32 %v1654_v30, 0.0  ;;  %v1216_v50 = vadd.f32 %v3684_v61, %v1215_v42  ;;  %v1646_v53 = vadd.f32 %v3689_v41, %v1645_v43 }
 0x17a   :  { %v2379_v31 = vpop.f32.mrf.mxu0  ;;  %v2445_v16 = vpop.f32.mrf.mxu1 }
 0x17b   :  { %1464 = vst.msk [vmem:[%s4362_s5 + $0xd0] sm:$0xff] %vm577_vm2, %v1400_v44  ;;  %1894 = vst.msk [vmem:[%s4363_s6 + $0xd0] sm:$0xff] %vm577_vm2, %v1830_v47  ;;  %v1398_v13 = vmax.f32 %v1216_v50, 0.0  ;;  %v1828_v21 = vmax.f32 %v1646_v53, 0.0  ;;  %v1227_v22 = vadd.f32 %v2379_v31, %v3684_v61  ;;  %v1657_v27 = vadd.f32 %v2445_v16, %v3689_v41 }
 0x17c   :  { %v1218_v54 = vpop.f32.mrf.mxu0  ;;  %v1648_v28 = vpop.f32.mrf.mxu1 }
 0x17d   :  { %1462 = vst.msk [vmem:[%s4362_s5 + $0xc0] sm:$0xff] %vm577_vm2, %v1398_v13  ;;  %1892 = vst.msk [vmem:[%s4363_s6 + $0xc0] sm:$0xff] %vm577_vm2, %v1828_v21  ;;  %v1401_v8 = vmax.f32 %v1227_v22, 0.0  ;;  %v1831_v33 = vmax.f32 %v1657_v27, 0.0  ;;  %v1219_v9 = vadd.f32 %v3684_v61, %v1218_v54  ;;  %v1649_v34 = vadd.f32 %v3689_v41, %v1648_v28 }
 0x17e   :  { %v2382_v14 = vpop.f32.mrf.mxu0  ;;  %v2448_v39 = vpop.f32.mrf.mxu1 }
 0x17f   :  { %1465 = vst.msk [vmem:[%s4362_s5 + $0xd8] sm:$0xff] %vm577_vm2, %v1401_v8  ;;  %1895 = vst.msk [vmem:[%s4363_s6 + $0xd8] sm:$0xff] %vm577_vm2, %v1831_v33  ;;  %v1399_v40 = vmax.f32 %v1219_v9, 0.0  ;;  %v1829_v45 = vmax.f32 %v1649_v34, 0.0  ;;  %v1240_v46 = vadd.f32 %v2382_v14, %v3684_v61  ;;  %v1670_v51 = vadd.f32 %v2448_v39, %v3689_v41 }
 0x180   :  { %v1231_v52 = vpop.f32.mrf.mxu0  ;;  %v1661_v55 = vpop.f32.mrf.mxu1 }
 0x181   :  { %1463 = vst.msk [vmem:[%s4362_s5 + $0xc8] sm:$0xff] %vm577_vm2, %v1399_v40  ;;  %1893 = vst.msk [vmem:[%s4363_s6 + $0xc8] sm:$0xff] %vm577_vm2, %v1829_v45  ;;  %v1404_v38 = vmax.f32 %v1240_v46, 0.0  ;;  %v1834_v56 = vmax.f32 %v1670_v51, 0.0  ;;  %v1232_v57 = vadd.f32 %v3684_v61, %v1231_v52  ;;  %v1662_v58 = vadd.f32 %v3689_v41, %v1661_v55 }
 0x182   :  { %v2383_v59 = vpop.f32.mrf.mxu0  ;;  %v2449_v60 = vpop.f32.mrf.mxu1 }
 0x183   :  { %1468 = vst.msk [vmem:[%s4362_s5 + $0xf0] sm:$0xff] %vm577_vm2, %v1404_v38  ;;  %1898 = vst.msk [vmem:[%s4363_s6 + $0xf0] sm:$0xff] %vm577_vm2, %v1834_v56  ;;  %v1402_v62 = vmax.f32 %v1232_v57, 0.0  ;;  %v1832_v63 = vmax.f32 %v1662_v58, 0.0  ;;  %v1243_v0 = vadd.f32 %v2383_v59, %v3684_v61  ;;  %v1673_v20 = vadd.f32 %v2449_v60, %v3689_v41 }
 0x184   :  { %v1234_v1 = vpop.f32.mrf.mxu0  ;;  %v1664_v2 = vpop.f32.mrf.mxu1 }
 0x185   :  { %1466 = vst.msk [vmem:[%s4362_s5 + $0xe0] sm:$0xff] %vm577_vm2, %v1402_v62  ;;  %1896 = vst.msk [vmem:[%s4363_s6 + $0xe0] sm:$0xff] %vm577_vm2, %v1832_v63  ;;  %v1405_v3 = vmax.f32 %v1243_v0, 0.0  ;;  %v1835_v4 = vmax.f32 %v1673_v20, 0.0  ;;  %v1235_v7 = vadd.f32 %v3684_v61, %v1234_v1  ;;  %v1665_v5 = vadd.f32 %v3689_v41, %v1664_v2 }
 0x186   :  { %v2386_v23 = vpop.f32.mrf.mxu0  ;;  %v2452_v10 = vpop.f32.mrf.mxu1 }
 0x187   :  { %1469 = vst.msk [vmem:[%s4362_s5 + $0xf8] sm:$0xff] %vm577_vm2, %v1405_v3  ;;  %1899 = vst.msk [vmem:[%s4363_s6 + $0xf8] sm:$0xff] %vm577_vm2, %v1835_v4  ;;  %v1403_v11 = vmax.f32 %v1235_v7, 0.0  ;;  %v1833_v12 = vmax.f32 %v1665_v5, 0.0  ;;  %v1256_v15 = vadd.f32 %v2386_v23, %v3684_v61  ;;  %v1686_v17 = vadd.f32 %v2452_v10, %v3689_v41 }
 0x188   :  { %v1247_v48 = vpop.f32.mrf.mxu0  ;;  %v1677_v18 = vpop.f32.mrf.mxu1 }
 0x189   :  { %1467 = vst.msk [vmem:[%s4362_s5 + $0xe8] sm:$0xff] %vm577_vm2, %v1403_v11  ;;  %1897 = vst.msk [vmem:[%s4363_s6 + $0xe8] sm:$0xff] %vm577_vm2, %v1833_v12  ;;  %v1408_v6 = vmax.f32 %v1256_v15, 0.0  ;;  %v1838_v19 = vmax.f32 %v1686_v17, 0.0  ;;  %v1248_v24 = vadd.f32 %v3684_v61, %v1247_v48  ;;  %v1678_v25 = vadd.f32 %v3689_v41, %v1677_v18 }
 0x18a   :  { %v2387_v26 = vpop.f32.mrf.mxu0  ;;  %v2453_v49 = vpop.f32.mrf.mxu1 }
 0x18b   :  { %1472 = vst.msk [vmem:[%s4362_s5 + $0x110] sm:$0xff] %vm577_vm2, %v1408_v6  ;;  %1902 = vst.msk [vmem:[%s4363_s6 + $0x110] sm:$0xff] %vm577_vm2, %v1838_v19  ;;  %v1406_v29 = vmax.f32 %v1248_v24, 0.0  ;;  %v1836_v32 = vmax.f32 %v1678_v25, 0.0  ;;  %v1259_v35 = vadd.f32 %v2387_v26, %v3684_v61  ;;  %v1689_v36 = vadd.f32 %v2453_v49, %v3689_v41 }
 0x18c   :  { %v1250_v37 = vpop.f32.mrf.mxu0  ;;  %v1680_v30 = vpop.f32.mrf.mxu1 }
 0x18d   :  { %1470 = vst.msk [vmem:[%s4362_s5 + $0x100] sm:$0xff] %vm577_vm2, %v1406_v29  ;;  %1900 = vst.msk [vmem:[%s4363_s6 + $0x100] sm:$0xff] %vm577_vm2, %v1836_v32  ;;  %v1409_v42 = vmax.f32 %v1259_v35, 0.0  ;;  %v1839_v43 = vmax.f32 %v1689_v36, 0.0  ;;  %v1251_v44 = vadd.f32 %v3684_v61, %v1250_v37  ;;  %v1681_v47 = vadd.f32 %v3689_v41, %v1680_v30 }
 0x18e   :  { %v2390_v50 = vpop.f32.mrf.mxu0  ;;  %v2456_v53 = vpop.f32.mrf.mxu1 }
 0x18f   :  { %1473 = vst.msk [vmem:[%s4362_s5 + $0x118] sm:$0xff] %vm577_vm2, %v1409_v42  ;;  %1903 = vst.msk [vmem:[%s4363_s6 + $0x118] sm:$0xff] %vm577_vm2, %v1839_v43  ;;  %v1407_v31 = vmax.f32 %v1251_v44, 0.0  ;;  %v1837_v16 = vmax.f32 %v1681_v47, 0.0  ;;  %v1272_v13 = vadd.f32 %v2390_v50, %v3684_v61  ;;  %v1702_v21 = vadd.f32 %v2456_v53, %v3689_v41 }
 0x190   :  { %v1263_v22 = vpop.f32.mrf.mxu0  ;;  %v1693_v27 = vpop.f32.mrf.mxu1 }
 0x191   :  { %1471 = vst.msk [vmem:[%s4362_s5 + $0x108] sm:$0xff] %vm577_vm2, %v1407_v31  ;;  %1901 = vst.msk [vmem:[%s4363_s6 + $0x108] sm:$0xff] %vm577_vm2, %v1837_v16  ;;  %v1412_v54 = vmax.f32 %v1272_v13, 0.0  ;;  %v1842_v28 = vmax.f32 %v1702_v21, 0.0  ;;  %v1264_v8 = vadd.f32 %v3684_v61, %v1263_v22  ;;  %v1694_v33 = vadd.f32 %v3689_v41, %v1693_v27 }
 0x192   :  { %v2391_v9 = vpop.f32.mrf.mxu0  ;;  %v2457_v34 = vpop.f32.mrf.mxu1 }
 0x193   :  { %1476 = vst.msk [vmem:[%s4362_s5 + $0x130] sm:$0xff] %vm577_vm2, %v1412_v54  ;;  %1906 = vst.msk [vmem:[%s4363_s6 + $0x130] sm:$0xff] %vm577_vm2, %v1842_v28  ;;  %v1410_v14 = vmax.f32 %v1264_v8, 0.0  ;;  %v1840_v39 = vmax.f32 %v1694_v33, 0.0  ;;  %v1275_v40 = vadd.f32 %v2391_v9, %v3684_v61  ;;  %v1705_v45 = vadd.f32 %v2457_v34, %v3689_v41 }
 0x194   :  { %v1266_v46 = vpop.f32.mrf.mxu0  ;;  %v1696_v51 = vpop.f32.mrf.mxu1 }
 0x195   :  { %1474 = vst.msk [vmem:[%s4362_s5 + $0x120] sm:$0xff] %vm577_vm2, %v1410_v14  ;;  %1904 = vst.msk [vmem:[%s4363_s6 + $0x120] sm:$0xff] %vm577_vm2, %v1840_v39  ;;  %v1413_v52 = vmax.f32 %v1275_v40, 0.0  ;;  %v1843_v55 = vmax.f32 %v1705_v45, 0.0  ;;  %v1267_v38 = vadd.f32 %v3684_v61, %v1266_v46  ;;  %v1697_v56 = vadd.f32 %v3689_v41, %v1696_v51 }
 0x196   :  { %v2394_v57 = vpop.f32.mrf.mxu0  ;;  %v2460_v58 = vpop.f32.mrf.mxu1 }
 0x197   :  { %1477 = vst.msk [vmem:[%s4362_s5 + $0x138] sm:$0xff] %vm577_vm2, %v1413_v52  ;;  %1907 = vst.msk [vmem:[%s4363_s6 + $0x138] sm:$0xff] %vm577_vm2, %v1843_v55  ;;  %v1411_v59 = vmax.f32 %v1267_v38, 0.0  ;;  %v1841_v60 = vmax.f32 %v1697_v56, 0.0  ;;  %v1288_v62 = vadd.f32 %v2394_v57, %v3684_v61  ;;  %v1718_v63 = vadd.f32 %v2460_v58, %v3689_v41 }
 0x198   :  { %v1279_v0 = vpop.f32.mrf.mxu0  ;;  %v1709_v20 = vpop.f32.mrf.mxu1 }
 0x199   :  { %1475 = vst.msk [vmem:[%s4362_s5 + $0x128] sm:$0xff] %vm577_vm2, %v1411_v59  ;;  %1905 = vst.msk [vmem:[%s4363_s6 + $0x128] sm:$0xff] %vm577_vm2, %v1841_v60  ;;  %v1416_v1 = vmax.f32 %v1288_v62, 0.0  ;;  %v1846_v2 = vmax.f32 %v1718_v63, 0.0  ;;  %v1280_v3 = vadd.f32 %v3684_v61, %v1279_v0  ;;  %v1710_v4 = vadd.f32 %v3689_v41, %v1709_v20 }
 0x19a   :  { %v2395_v7 = vpop.f32.mrf.mxu0  ;;  %v2461_v5 = vpop.f32.mrf.mxu1 }
 0x19b   :  { %1480 = vst.msk [vmem:[%s4362_s5 + $0x150] sm:$0xff] %vm577_vm2, %v1416_v1  ;;  %1910 = vst.msk [vmem:[%s4363_s6 + $0x150] sm:$0xff] %vm577_vm2, %v1846_v2  ;;  %v1414_v23 = vmax.f32 %v1280_v3, 0.0  ;;  %v1844_v10 = vmax.f32 %v1710_v4, 0.0  ;;  %v1291_v11 = vadd.f32 %v2395_v7, %v3684_v61  ;;  %v1721_v12 = vadd.f32 %v2461_v5, %v3689_v41 }
 0x19c   :  { %v1282_v15 = vpop.f32.mrf.mxu0  ;;  %v1712_v17 = vpop.f32.mrf.mxu1 }
 0x19d   :  { %1478 = vst.msk [vmem:[%s4362_s5 + $0x140] sm:$0xff] %vm577_vm2, %v1414_v23  ;;  %1908 = vst.msk [vmem:[%s4363_s6 + $0x140] sm:$0xff] %vm577_vm2, %v1844_v10  ;;  %v1417_v48 = vmax.f32 %v1291_v11, 0.0  ;;  %v1847_v18 = vmax.f32 %v1721_v12, 0.0  ;;  %v1283_v6 = vadd.f32 %v3684_v61, %v1282_v15  ;;  %v1713_v19 = vadd.f32 %v3689_v41, %v1712_v17 }
 0x19e   :  { %v2398_v24 = vpop.f32.mrf.mxu0  ;;  %v2464_v25 = vpop.f32.mrf.mxu1 }
 0x19f   :  { %1481 = vst.msk [vmem:[%s4362_s5 + $0x158] sm:$0xff] %vm577_vm2, %v1417_v48  ;;  %1911 = vst.msk [vmem:[%s4363_s6 + $0x158] sm:$0xff] %vm577_vm2, %v1847_v18  ;;  %v1415_v26 = vmax.f32 %v1283_v6, 0.0  ;;  %v1845_v49 = vmax.f32 %v1713_v19, 0.0  ;;  %v1304_v29 = vadd.f32 %v2398_v24, %v3684_v61  ;;  %v1734_v32 = vadd.f32 %v2464_v25, %v3689_v41 }
 0x1a0   :  { %v1295_v35 = vpop.f32.mrf.mxu0  ;;  %v1725_v36 = vpop.f32.mrf.mxu1 }
 0x1a1   :  { %1479 = vst.msk [vmem:[%s4362_s5 + $0x148] sm:$0xff] %vm577_vm2, %v1415_v26  ;;  %1909 = vst.msk [vmem:[%s4363_s6 + $0x148] sm:$0xff] %vm577_vm2, %v1845_v49  ;;  %v1420_v37 = vmax.f32 %v1304_v29, 0.0  ;;  %v1850_v30 = vmax.f32 %v1734_v32, 0.0  ;;  %v1296_v42 = vadd.f32 %v3684_v61, %v1295_v35  ;;  %v1726_v43 = vadd.f32 %v3689_v41, %v1725_v36 }
 0x1a2   :  { %v2399_v44 = vpop.f32.mrf.mxu0  ;;  %v2465_v47 = vpop.f32.mrf.mxu1 }
 0x1a3   :  { %1484 = vst.msk [vmem:[%s4362_s5 + $0x170] sm:$0xff] %vm577_vm2, %v1420_v37  ;;  %1914 = vst.msk [vmem:[%s4363_s6 + $0x170] sm:$0xff] %vm577_vm2, %v1850_v30  ;;  %v1418_v50 = vmax.f32 %v1296_v42, 0.0  ;;  %v1848_v53 = vmax.f32 %v1726_v43, 0.0  ;;  %v1307_v31 = vadd.f32 %v2399_v44, %v3684_v61  ;;  %v1737_v16 = vadd.f32 %v2465_v47, %v3689_v41 }
 0x1a4   :  { %v1298_v13 = vpop.f32.mrf.mxu0  ;;  %v1728_v21 = vpop.f32.mrf.mxu1 }
 0x1a5   :  { %1482 = vst.msk [vmem:[%s4362_s5 + $0x160] sm:$0xff] %vm577_vm2, %v1418_v50  ;;  %1912 = vst.msk [vmem:[%s4363_s6 + $0x160] sm:$0xff] %vm577_vm2, %v1848_v53  ;;  %v1421_v22 = vmax.f32 %v1307_v31, 0.0  ;;  %v1851_v27 = vmax.f32 %v1737_v16, 0.0  ;;  %v1299_v54 = vadd.f32 %v3684_v61, %v1298_v13  ;;  %v1729_v28 = vadd.f32 %v3689_v41, %v1728_v21 }
 0x1a6   :  { %v2402_v8 = vpop.f32.mrf.mxu0  ;;  %v2468_v33 = vpop.f32.mrf.mxu1 }
 0x1a7   :  { %1485 = vst.msk [vmem:[%s4362_s5 + $0x178] sm:$0xff] %vm577_vm2, %v1421_v22  ;;  %1915 = vst.msk [vmem:[%s4363_s6 + $0x178] sm:$0xff] %vm577_vm2, %v1851_v27  ;;  %v1419_v9 = vmax.f32 %v1299_v54, 0.0  ;;  %v1849_v34 = vmax.f32 %v1729_v28, 0.0  ;;  %v1320_v14 = vadd.f32 %v2402_v8, %v3684_v61  ;;  %v1750_v39 = vadd.f32 %v2468_v33, %v3689_v41 }
 0x1a8   :  { %v1311_v40 = vpop.f32.mrf.mxu0  ;;  %v1741_v45 = vpop.f32.mrf.mxu1 }
 0x1a9   :  { %1483 = vst.msk [vmem:[%s4362_s5 + $0x168] sm:$0xff] %vm577_vm2, %v1419_v9  ;;  %1913 = vst.msk [vmem:[%s4363_s6 + $0x168] sm:$0xff] %vm577_vm2, %v1849_v34  ;;  %v1424_v46 = vmax.f32 %v1320_v14, 0.0  ;;  %v1854_v51 = vmax.f32 %v1750_v39, 0.0  ;;  %v1312_v52 = vadd.f32 %v3684_v61, %v1311_v40  ;;  %v1742_v55 = vadd.f32 %v3689_v41, %v1741_v45 }
 0x1aa   :  { %v2403_v38 = vpop.f32.mrf.mxu0  ;;  %v2469_v56 = vpop.f32.mrf.mxu1 }
 0x1ab   :  { %1488 = vst.msk [vmem:[%s4362_s5 + $0x190] sm:$0xff] %vm577_vm2, %v1424_v46  ;;  %1918 = vst.msk [vmem:[%s4363_s6 + $0x190] sm:$0xff] %vm577_vm2, %v1854_v51  ;;  %v1422_v57 = vmax.f32 %v1312_v52, 0.0  ;;  %v1852_v58 = vmax.f32 %v1742_v55, 0.0  ;;  %v1323_v59 = vadd.f32 %v2403_v38, %v3684_v61  ;;  %v1753_v60 = vadd.f32 %v2469_v56, %v3689_v41 }
 0x1ac   :  { %v1314_v62 = vpop.f32.mrf.mxu0  ;;  %v1744_v63 = vpop.f32.mrf.mxu1 }
 0x1ad   :  { %1486 = vst.msk [vmem:[%s4362_s5 + $0x180] sm:$0xff] %vm577_vm2, %v1422_v57  ;;  %1916 = vst.msk [vmem:[%s4363_s6 + $0x180] sm:$0xff] %vm577_vm2, %v1852_v58  ;;  %v1425_v0 = vmax.f32 %v1323_v59, 0.0  ;;  %v1855_v20 = vmax.f32 %v1753_v60, 0.0  ;;  %v1315_v1 = vadd.f32 %v3684_v61, %v1314_v62  ;;  %v1745_v2 = vadd.f32 %v3689_v41, %v1744_v63 }
 0x1ae   :  { %v2406_v3 = vpop.f32.mrf.mxu0  ;;  %v2472_v4 = vpop.f32.mrf.mxu1 }
 0x1af   :  { %1489 = vst.msk [vmem:[%s4362_s5 + $0x198] sm:$0xff] %vm577_vm2, %v1425_v0  ;;  %1919 = vst.msk [vmem:[%s4363_s6 + $0x198] sm:$0xff] %vm577_vm2, %v1855_v20  ;;  %v1423_v7 = vmax.f32 %v1315_v1, 0.0  ;;  %v1853_v5 = vmax.f32 %v1745_v2, 0.0  ;;  %v1336_v23 = vadd.f32 %v2406_v3, %v3684_v61  ;;  %v1766_v10 = vadd.f32 %v2472_v4, %v3689_v41 }
 0x1b0   :  { %v1327_v11 = vpop.f32.mrf.mxu0  ;;  %v1757_v12 = vpop.f32.mrf.mxu1 }
 0x1b1   :  { %1487 = vst.msk [vmem:[%s4362_s5 + $0x188] sm:$0xff] %vm577_vm2, %v1423_v7  ;;  %1917 = vst.msk [vmem:[%s4363_s6 + $0x188] sm:$0xff] %vm577_vm2, %v1853_v5  ;;  %v1428_v15 = vmax.f32 %v1336_v23, 0.0  ;;  %v1858_v17 = vmax.f32 %v1766_v10, 0.0  ;;  %v1328_v48 = vadd.f32 %v3684_v61, %v1327_v11  ;;  %v1758_v18 = vadd.f32 %v3689_v41, %v1757_v12 }
 0x1b2   :  { %v2407_v6 = vpop.f32.mrf.mxu0  ;;  %v2473_v19 = vpop.f32.mrf.mxu1 }
 0x1b3   :  { %1492 = vst.msk [vmem:[%s4362_s5 + $0x1b0] sm:$0xff] %vm577_vm2, %v1428_v15  ;;  %1922 = vst.msk [vmem:[%s4363_s6 + $0x1b0] sm:$0xff] %vm577_vm2, %v1858_v17  ;;  %v1426_v24 = vmax.f32 %v1328_v48, 0.0  ;;  %v1856_v25 = vmax.f32 %v1758_v18, 0.0  ;;  %v1339_v26 = vadd.f32 %v2407_v6, %v3684_v61  ;;  %v1769_v49 = vadd.f32 %v2473_v19, %v3689_v41 }
 0x1b4   :  { %v1330_v29 = vpop.f32.mrf.mxu0  ;;  %v1760_v32 = vpop.f32.mrf.mxu1 }
 0x1b5   :  { %1490 = vst.msk [vmem:[%s4362_s5 + $0x1a0] sm:$0xff] %vm577_vm2, %v1426_v24  ;;  %1920 = vst.msk [vmem:[%s4363_s6 + $0x1a0] sm:$0xff] %vm577_vm2, %v1856_v25  ;;  %v1429_v35 = vmax.f32 %v1339_v26, 0.0  ;;  %v1859_v36 = vmax.f32 %v1769_v49, 0.0  ;;  %v1331_v37 = vadd.f32 %v3684_v61, %v1330_v29  ;;  %v1761_v30 = vadd.f32 %v3689_v41, %v1760_v32 }
 0x1b6   :  { %v2410_v42 = vpop.f32.mrf.mxu0  ;;  %v2476_v43 = vpop.f32.mrf.mxu1 }
 0x1b7   :  { %1493 = vst.msk [vmem:[%s4362_s5 + $0x1b8] sm:$0xff] %vm577_vm2, %v1429_v35  ;;  %1923 = vst.msk [vmem:[%s4363_s6 + $0x1b8] sm:$0xff] %vm577_vm2, %v1859_v36  ;;  %v1427_v44 = vmax.f32 %v1331_v37, 0.0  ;;  %v1857_v47 = vmax.f32 %v1761_v30, 0.0  ;;  %v1352_v50 = vadd.f32 %v2410_v42, %v3684_v61  ;;  %v1782_v53 = vadd.f32 %v2476_v43, %v3689_v41 }
 0x1b8   :  { %v1343_v31 = vpop.f32.mrf.mxu0  ;;  %v1773_v16 = vpop.f32.mrf.mxu1 }
 0x1b9   :  { %1491 = vst.msk [vmem:[%s4362_s5 + $0x1a8] sm:$0xff] %vm577_vm2, %v1427_v44  ;;  %1921 = vst.msk [vmem:[%s4363_s6 + $0x1a8] sm:$0xff] %vm577_vm2, %v1857_v47  ;;  %v1432_v13 = vmax.f32 %v1352_v50, 0.0  ;;  %v1862_v21 = vmax.f32 %v1782_v53, 0.0  ;;  %v1344_v22 = vadd.f32 %v3684_v61, %v1343_v31  ;;  %v1774_v27 = vadd.f32 %v3689_v41, %v1773_v16 }
 0x1ba   :  { %v2411_v54 = vpop.f32.mrf.mxu0  ;;  %v2477_v28 = vpop.f32.mrf.mxu1 }
 0x1bb   :  { %1496 = vst.msk [vmem:[%s4362_s5 + $0x1d0] sm:$0xff] %vm577_vm2, %v1432_v13  ;;  %1926 = vst.msk [vmem:[%s4363_s6 + $0x1d0] sm:$0xff] %vm577_vm2, %v1862_v21  ;;  %v1430_v8 = vmax.f32 %v1344_v22, 0.0  ;;  %v1860_v33 = vmax.f32 %v1774_v27, 0.0  ;;  %v1355_v9 = vadd.f32 %v2411_v54, %v3684_v61  ;;  %v1785_v34 = vadd.f32 %v2477_v28, %v3689_v41 }
 0x1bc   :  { %v1346_v14 = vpop.f32.mrf.mxu0  ;;  %v1776_v39 = vpop.f32.mrf.mxu1 }
 0x1bd   :  { %1494 = vst.msk [vmem:[%s4362_s5 + $0x1c0] sm:$0xff] %vm577_vm2, %v1430_v8  ;;  %1924 = vst.msk [vmem:[%s4363_s6 + $0x1c0] sm:$0xff] %vm577_vm2, %v1860_v33  ;;  %v1433_v40 = vmax.f32 %v1355_v9, 0.0  ;;  %v1863_v45 = vmax.f32 %v1785_v34, 0.0  ;;  %v1347_v46 = vadd.f32 %v3684_v61, %v1346_v14  ;;  %v1777_v51 = vadd.f32 %v3689_v41, %v1776_v39 }
 0x1be   :  { %v2414_v52 = vpop.f32.mrf.mxu0  ;;  %v2480_v55 = vpop.f32.mrf.mxu1 }
 0x1bf   :  { %1497 = vst.msk [vmem:[%s4362_s5 + $0x1d8] sm:$0xff] %vm577_vm2, %v1433_v40  ;;  %1927 = vst.msk [vmem:[%s4363_s6 + $0x1d8] sm:$0xff] %vm577_vm2, %v1863_v45  ;;  %v1431_v38 = vmax.f32 %v1347_v46, 0.0  ;;  %v1861_v56 = vmax.f32 %v1777_v51, 0.0  ;;  %v1368_v57 = vadd.f32 %v2414_v52, %v3684_v61  ;;  %v1798_v58 = vadd.f32 %v2480_v55, %v3689_v41 }
 0x1c0   :  { %v1359_v59 = vpop.f32.mrf.mxu0  ;;  %v1789_v60 = vpop.f32.mrf.mxu1 }
 0x1c1   :  { %1495 = vst.msk [vmem:[%s4362_s5 + $0x1c8] sm:$0xff] %vm577_vm2, %v1431_v38  ;;  %1925 = vst.msk [vmem:[%s4363_s6 + $0x1c8] sm:$0xff] %vm577_vm2, %v1861_v56  ;;  %v1436_v62 = vmax.f32 %v1368_v57, 0.0  ;;  %v1866_v63 = vmax.f32 %v1798_v58, 0.0  ;;  %v1360_v0 = vadd.f32 %v3684_v61, %v1359_v59  ;;  %v1790_v20 = vadd.f32 %v3689_v41, %v1789_v60  ;;  %v2488_v61 = vld [vmem:[%s4359_s2 + $0x2] ss:$0 sm:$0xff] }
 0x1c2   :  { %v2415_v1 = vpop.f32.mrf.mxu0  ;;  %v2481_v2 = vpop.f32.mrf.mxu1  ;;  %v2489_v41 = vld [vmem:[%s4359_s2 + $0x3] ss:$0 sm:$0xff] }
 0x1c3   :  { %1500 = vst.msk [vmem:[%s4362_s5 + $0x1f0] sm:$0xff] %vm577_vm2, %v1436_v62  ;;  %1930 = vst.msk [vmem:[%s4363_s6 + $0x1f0] sm:$0xff] %vm577_vm2, %v1866_v63  ;;  %v1434_v3 = vmax.f32 %v1360_v0, 0.0  ;;  %v1864_v4 = vmax.f32 %v1790_v20, 0.0  ;;  %v1371_v7 = vadd.f32 %v2488_v61, %v2415_v1  ;;  %v1801_v5 = vadd.f32 %v2489_v41, %v2481_v2 }
 0x1c4   :  { %v1362_v23 = vpop.f32.mrf.mxu0  ;;  %v1792_v10 = vpop.f32.mrf.mxu1 }
 0x1c5   :  { %1498 = vst.msk [vmem:[%s4362_s5 + $0x1e0] sm:$0xff] %vm577_vm2, %v1434_v3  ;;  %1928 = vst.msk [vmem:[%s4363_s6 + $0x1e0] sm:$0xff] %vm577_vm2, %v1864_v4  ;;  %v1437_v11 = vmax.f32 %v1371_v7, 0.0  ;;  %v1867_v12 = vmax.f32 %v1801_v5, 0.0  ;;  %v1363_v15 = vadd.f32 %v2488_v61, %v1362_v23  ;;  %v1793_v17 = vadd.f32 %v2489_v41, %v1792_v10 }
 0x1c7   :  { %1501 = vst.msk [vmem:[%s4362_s5 + $0x1f8] sm:$0xff] %vm577_vm2, %v1437_v11  ;;  %1931 = vst.msk [vmem:[%s4363_s6 + $0x1f8] sm:$0xff] %vm577_vm2, %v1867_v12  ;;  %v1435_v48 = vmax.f32 %v1363_v15, 0.0  ;;  %v1865_v18 = vmax.f32 %v1793_v17, 0.0 }
 0x1c9   :  { %1499 = vst.msk [vmem:[%s4362_s5 + $0x1e8] sm:$0xff] %vm577_vm2, %v1435_v48  ;;  %1929 = vst.msk [vmem:[%s4363_s6 + $0x1e8] sm:$0xff] %vm577_vm2, %v1865_v18 }

</bundles_post_ra>
